<compile_context>
chip_gen: v7x
topology: tpu7x:2x2x1
jax: 0.10.0
libtpu: 0.0.40
codegen_flags: <defaults>
</compile_context>

<pallas_src>
import jax
import jax.numpy as jnp
from jax.experimental import pallas as pl
from jax.experimental.pallas import tpu as pltpu

_LANE_CANDIDATES = (1024, 512, 256, 128)   # lane-dense last-dim choices (multiples of 128)
_PAD_LANES = 1024                          # lane width used when padding is unavoidable
_MIN_PALLAS_ELEMS = 32 * 1024              # below this, plain jnp beats the launch overhead
_VMEM_TILE_BUDGET = 20 * 1024 * 1024       # double-buffered tile footprint target (bytes)
_VMEM_LIMIT = 32 * 1024 * 1024             # explicit scoped-VMEM limit, legal on v5e/v6e/v7x


def _cdiv(a, b):
    return -(-a // b)


# ---------------------------------------------------------------------------
# Kernels (all purely elementwise; math in f32, I/O in native dtype)
# ---------------------------------------------------------------------------
def _gauss_math(x32, a, a_m1, mu, neg_s1, neg_s2):
    d = x32 - mu
    d2 = d * d
    below = x32 < mu
    # Single transcendental per element: select the (negated) sigma, then one exp.
    e = jnp.exp(jnp.where(below, neg_s1, neg_s2) * d2)
    return jnp.where(below, a * e, 1.0 + a_m1 * e)


def _maskupdate_math(x32, alpha):
    # MaskUpdate: relu(x) ** alpha  (pow via log/exp on the EUP; guard log(0)).
    r = jnp.maximum(x32, 0.0)
    pos = r > 0.0
    return jnp.where(pos, jnp.exp(alpha * jnp.log(jnp.where(pos, r, 1.0))), 0.0)


def _gauss_kernel(params_ref, x_ref, o_ref):
    # params (SMEM, pre-clamped/folded in wrapper): [a, a-1, mu, -sigma1, -sigma2]
    a, a_m1, mu = params_ref[0], params_ref[1], params_ref[2]
    neg_s1, neg_s2 = params_ref[3], params_ref[4]
    x32 = x_ref[...].astype(jnp.float32)
    o_ref[...] = _gauss_math(x32, a, a_m1, mu, neg_s1, neg_s2).astype(o_ref.dtype)


def _gauss_maskupdate_kernel(params_ref, x_ref, activ_ref, upd_ref):
    # params (SMEM): [a, a-1, mu, -sigma1, -sigma2, alpha]
    a, a_m1, mu = params_ref[0], params_ref[1], params_ref[2]
    neg_s1, neg_s2, alpha = params_ref[3], params_ref[4], params_ref[5]
    x32 = x_ref[...].astype(jnp.float32)
    activ_ref[...] = _gauss_math(x32, a, a_m1, mu, neg_s1, neg_s2).astype(activ_ref.dtype)
    upd_ref[...] = _maskupdate_math(x32, alpha).astype(upd_ref.dtype)


def _forward_attention_kernel(params_ref, mask_ref, conv_ref,
                              convout_ref, activ_ref, upd_ref):
    # ForwardAttentionLayer elementwise tail, fused:
    #   maskActiv = Gauss(maskFeatures); convOut = convFeatures*maskActiv;
    #   maskUpdate = relu(maskFeatures)**alpha
    a, a_m1, mu = params_ref[0], params_ref[1], params_ref[2]
    neg_s1, neg_s2, alpha = params_ref[3], params_ref[4], params_ref[5]
    x32 = mask_ref[...].astype(jnp.float32)
    activ = _gauss_math(x32, a, a_m1, mu, neg_s1, neg_s2)
    activ_ref[...] = activ.astype(activ_ref.dtype)
    convout_ref[...] = (conv_ref[...].astype(jnp.float32) * activ).astype(convout_ref.dtype)
    upd_ref[...] = _maskupdate_math(x32, alpha).astype(upd_ref.dtype)


# ---------------------------------------------------------------------------
# Lane-dense layout helpers
# ---------------------------------------------------------------------------
def _lane_dense_plan(total):
    """Pick a lane width; return (rows, lanes, pad). pad==0 means no copies needed."""
    for lanes in _LANE_CANDIDATES:
        if total % lanes == 0:
            return total // lanes, lanes, 0
    lanes = _PAD_LANES
    rows = _cdiv(total, lanes)
    return rows, lanes, rows * lanes - total


def _to_lane_dense(x, rows, lanes, pad):
    flat = x.reshape(-1)
    if pad:
        flat = jnp.pad(flat, (0, pad))     # rare: only when total % 128 != 0
    return flat.reshape(rows, lanes)


def _restore(y2d, orig_shape, total, pad):
    if pad:
        return y2d.reshape(-1)[:total].reshape(orig_shape)
    return y2d.reshape(orig_shape)


def _pick_block_rows(rows, lanes, n_arrays, itemsize):
    """Largest row tile whose double-buffered footprint across all I/O arrays fits budget."""
    tile_budget = _VMEM_TILE_BUDGET // (2 * n_arrays)
    max_rows = max(1, tile_budget // (lanes * itemsize))
    if rows <= max_rows:
        return rows                         # single block == full array dims (always legal)
    # multiple of 256 satisfies the (8,128)/(16,128)/(32,128) sublane-tile constraints
    return max(256, (max_rows // 256) * 256)


def _clamped_gauss_params(a, mu, sigma1, sigma2):
    # Same clamps the PyTorch forward applies to .data on every call.
    a = jnp.clip(jnp.asarray(a, jnp.float32), 1.01, 6.0)
    mu = jnp.clip(jnp.asarray(mu, jnp.float32), 0.1, 3.0)
    s1 = jnp.clip(jnp.asarray(sigma1, jnp.float32), 0.5, 2.0)
    s2 = jnp.clip(jnp.asarray(sigma2, jnp.float32), 0.5, 2.0)
    return a, mu, s1, s2


def _elementwise_call(kernel, params, inputs2d, out_dtypes, rows, lanes, block_rows):
    grid = (pl.cdiv(rows, block_rows),)     # ragged last block handled by Pallas masking
    block = pl.BlockSpec((block_rows, lanes), lambda i: (i, 0))
    outs = pl.pallas_call(
        kernel,
        out_shape=tuple(jax.ShapeDtypeStruct((rows, lanes), dt) for dt in out_dtypes),
        grid=grid,
        in_specs=[pl.BlockSpec(memory_space=pltpu.SMEM)] + [block] * len(inputs2d),
        out_specs=tuple(block for _ in out_dtypes),
        compiler_params=pltpu.CompilerParams(
            dimension_semantics=("parallel",),
            vmem_limit_bytes=_VMEM_LIMIT,
        ),
    )(params, *inputs2d)
    return outs


# ---------------------------------------------------------------------------
# Public wrappers
# ---------------------------------------------------------------------------
def gauss_activation(x, a, mu, sigma1, sigma2):
    """GaussActivation.forward: piecewise Gaussian activation; preserves x.dtype."""
    a_c, mu_c, s1, s2 = _clamped_gauss_params(a, mu, sigma1, sigma2)
    if x.size < _MIN_PALLAS_ELEMS:          # tiny decoder maps: plain jnp is cheaper
        return _gauss_math(x.astype(jnp.float32), a_c, a_c - 1.0, mu_c, -s1, -s2).astype(x.dtype)

    total = x.size
    rows, lanes, pad = _lane_dense_plan(total)
    x2d = _to_lane_dense(x, rows, lanes, pad)
    block_rows = _pick_block_rows(rows, lanes, 2, jnp.dtype(x.dtype).itemsize)
    params = jnp.stack([a_c, a_c - 1.0, mu_c, -s1, -s2]).astype(jnp.float32)

    outs = _elementwise_call(_gauss_kernel, params, [x2d], (x.dtype,), rows, lanes, block_rows)
    return _restore(outs[0], x.shape, total, pad)


def gauss_activation_and_mask_update(x, a, mu, sigma1, sigma2, alpha):
    """ReverseMaskConv mask branch: (GaussActivation(x), relu(x)**alpha), one HBM read of x."""
    a_c, mu_c, s1, s2 = _clamped_gauss_params(a, mu, sigma1, sigma2)
    alpha_f = jnp.asarray(alpha, jnp.float32)
    if x.size < _MIN_PALLAS_ELEMS:
        x32 = x.astype(jnp.float32)
        return (_gauss_math(x32, a_c, a_c - 1.0, mu_c, -s1, -s2).astype(x.dtype),
                _maskupdate_math(x32, alpha_f).astype(x.dtype))

    total = x.size
    rows, lanes, pad = _lane_dense_plan(total)
    x2d = _to_lane_dense(x, rows, lanes, pad)
    block_rows = _pick_block_rows(rows, lanes, 3, jnp.dtype(x.dtype).itemsize)
    params = jnp.stack([a_c, a_c - 1.0, mu_c, -s1, -s2, alpha_f]).astype(jnp.float32)

    activ2d, upd2d = _elementwise_call(
        _gauss_maskupdate_kernel, params, [x2d], (x.dtype, x.dtype), rows, lanes, block_rows)
    return _restore(activ2d, x.shape, total, pad), _restore(upd2d, x.shape, total, pad)


def forward_attention_elementwise(conv_features, mask_features, a, mu, sigma1, sigma2, alpha):
    """ForwardAttentionLayer elementwise tail (after the two convs), fully fused:
    returns (convOut, maskUpdate, maskActiv) = (conv*Gauss(mask), relu(mask)**alpha, Gauss(mask))."""
    assert conv_features.shape == mask_features.shape
    a_c, mu_c, s1, s2 = _clamped_gauss_params(a, mu, sigma1, sigma2)
    alpha_f = jnp.asarray(alpha, jnp.float32)

    if mask_features.size < _MIN_PALLAS_ELEMS:
        m32 = mask_features.astype(jnp.float32)
        activ = _gauss_math(m32, a_c, a_c - 1.0, mu_c, -s1, -s2)
        conv_out = (conv_features.astype(jnp.float32) * activ).astype(conv_features.dtype)
        return (conv_out,
                _maskupdate_math(m32, alpha_f).astype(mask_features.dtype),
                activ.astype(mask_features.dtype))

    total = mask_features.size
    rows, lanes, pad = _lane_dense_plan(total)
    mask2d = _to_lane_dense(mask_features, rows, lanes, pad)
    conv2d = _to_lane_dense(conv_features, rows, lanes, pad)
    itemsize = max(jnp.dtype(mask_features.dtype).itemsize, jnp.dtype(conv_features.dtype).itemsize)
    block_rows = _pick_block_rows(rows, lanes, 5, itemsize)   # 2 inputs + 3 outputs
    params = jnp.stack([a_c, a_c - 1.0, mu_c, -s1, -s2, alpha_f]).astype(jnp.float32)

    convout2d, activ2d, upd2d = _elementwise_call(
        _forward_attention_kernel, params, [mask2d, conv2d],
        (conv_features.dtype, mask_features.dtype, mask_features.dtype),
        rows, lanes, block_rows)

    shape = mask_features.shape
    return (_restore(convout2d, shape, total, pad),
            _restore(upd2d, shape, total, pad),
            _restore(activ2d, shape, total, pad))


# ---------------------------------------------------------------------------
# Demo / correctness check
# ---------------------------------------------------------------------------
if __name__ == "__main__":
    key = jax.random.PRNGKey(0)
    k1, k2, k3 = jax.random.split(key, 3)

    # Post-conv feature maps of a ForwardAttentionLayer (4->64, stride-2): batch=2,
    # channels=64, 32x32 spatial -> exercises the Pallas path (131072 elements, lanes=1024).
    conv_feats = jax.random.normal(k1, (2, 64, 32, 32), dtype=jnp.float32)
    mask_feats = jax.random.normal(k2, (2, 64, 32, 32), dtype=jnp.float32) + 1.0
    # Tiny decoder-stage map -> small-tensor fast path.
    tiny = jax.random.normal(k3, (2, 4, 16, 16), dtype=jnp.float32) + 1.0

    # GaussActivation(1.1, 2.0, 1.0, 1.0) + MaskUpdate(0.8), as in ForwardAttentionLayer.
    a, mu, sigma1, sigma2, alpha = 1.1, 2.0, 1.0, 1.0, 0.8

    # Plain-JAX references (same semantics as the PyTorch forward).
    def ref_gauss(x):
        a_c = jnp.clip(jnp.float32(a), 1.01, 6.0)
        mu_c = jnp.clip(jnp.float32(mu), 0.1, 3.0)
        s1_c = jnp.clip(jnp.float32(sigma1), 0.5, 2.0)
        s2_c = jnp.clip(jnp.float32(sigma2), 0.5, 2.0)
        xf = x.astype(jnp.float32)
        left = a_c * jnp.exp(-s1_c * (xf - mu_c) ** 2)
        right = 1.0 + (a_c - 1.0) * jnp.exp(-s2_c * (xf - mu_c) ** 2)
        return jnp.where(xf < mu_c, left, right)

    def ref_update(x):
        return jnp.power(jnp.maximum(x.astype(jnp.float32), 0.0), jnp.float32(alpha))

    # 1) GaussActivation alone (Pallas path).
    out = gauss_activation(mask_feats, a, mu, sigma1, sigma2)
    # 2) Fused Gauss + MaskUpdate (Pallas path).
    activ, upd = gauss_activation_and_mask_update(mask_feats, a, mu, sigma1, sigma2, alpha)
    # 3) Fully fused ForwardAttentionLayer tail (Pallas path).
    conv_out, mask_upd, mask_activ = forward_attention_elementwise(
        conv_feats, mask_feats, a, mu, sigma1, sigma2, alpha)
    # 4) Tiny-tensor fast path.
    out_tiny = gauss_activation(tiny, a, mu, sigma1, sigma2)
    # 5) bf16 I/O preserved (Pallas path, native-dtype tiles).
    mask_bf16 = mask_feats.astype(jnp.bfloat16)
    out_bf16 = gauss_activation(mask_bf16, a, mu, sigma1, sigma2)

    jax.block_until_ready((out, activ, upd, conv_out, mask_upd, mask_activ, out_tiny, out_bf16))

    ra = ref_gauss(mask_feats)
    ru = ref_update(mask_feats)

    assert out.shape == mask_feats.shape and out.dtype == mask_feats.dtype
    assert jnp.max(jnp.abs(out - ra)) < 1e-5
    assert jnp.max(jnp.abs(activ - ra)) < 1e-5
    assert jnp.max(jnp.abs(upd - ru)) < 1e-4
    assert conv_out.dtype == conv_feats.dtype
    assert jnp.max(jnp.abs(conv_out - conv_feats * ra)) < 1e-4
    assert jnp.max(jnp.abs(mask_activ - ra)) < 1e-5
    assert jnp.max(jnp.abs(mask_upd - ru)) < 1e-4
    assert out_tiny.shape == tiny.shape and jnp.max(jnp.abs(out_tiny - ref_gauss(tiny))) < 1e-5
    assert out_bf16.dtype == jnp.bfloat16
    assert jnp.max(jnp.abs(out_bf16.astype(jnp.float32) - ref_gauss(mask_bf16))) < 2e-2

    print("KERNEL_OK")
</pallas_src>

<mosaic_0001>
module attributes {stable_mosaic.version = 11 : i64} {
  func.func @_gauss_kernel(%arg0: i32, %arg1: memref<5xf32, #tpu.memory_space<smem>>, %arg2: memref<128x1024xf32, #tpu.memory_space<vmem>>, %arg3: memref<128x1024xf32, #tpu.memory_space<vmem>>) attributes {dimension_semantics = [#tpu.dimension_semantics<parallel>], iteration_bounds = array<i64: 1>, scalar_prefetch = 0 : i64, scratch_operands = 0 : i64, tpu.core_type = #tpu.core_type<tc>, window_params = [{transform_indices = @transform_0, window_bounds = array<i64: 5>}, {transform_indices = @transform_1, window_bounds = array<i64: 128, 1024>}, {transform_indices = @transform_2, window_bounds = array<i64: 128, 1024>}]} {
    %c0 = arith.constant 0 : index
    %0 = memref.load %arg1[%c0] : memref<5xf32, #tpu.memory_space<smem>>
    %c1 = arith.constant 1 : index
    %1 = memref.load %arg1[%c1] : memref<5xf32, #tpu.memory_space<smem>>
    %c2 = arith.constant 2 : index
    %2 = memref.load %arg1[%c2] : memref<5xf32, #tpu.memory_space<smem>>
    %c3 = arith.constant 3 : index
    %3 = memref.load %arg1[%c3] : memref<5xf32, #tpu.memory_space<smem>>
    %c4 = arith.constant 4 : index
    %4 = memref.load %arg1[%c4] : memref<5xf32, #tpu.memory_space<smem>>
    %c0_0 = arith.constant 0 : index
    %c0_1 = arith.constant 0 : index
    %5 = vector.load %arg2[%c0_0, %c0_1] : memref<128x1024xf32, #tpu.memory_space<vmem>>, vector<128x1024xf32>
    %6 = vector.broadcast %2 : f32 to vector<128x1024xf32>
    %7 = arith.subf %5, %6 : vector<128x1024xf32>
    %8 = arith.mulf %7, %7 : vector<128x1024xf32>
    %9 = vector.broadcast %2 : f32 to vector<128x1024xf32>
    %10 = arith.cmpf olt, %5, %9 : vector<128x1024xf32>
    %11 = vector.broadcast %3 : f32 to vector<128x1024xf32>
    %12 = vector.broadcast %4 : f32 to vector<128x1024xf32>
    %13 = arith.select %10, %11, %12 : vector<128x1024xi1>, vector<128x1024xf32>
    %14 = arith.mulf %13, %8 : vector<128x1024xf32>
    %15 = math.exp %14 : vector<128x1024xf32>
    %16 = vector.broadcast %0 : f32 to vector<128x1024xf32>
    %17 = arith.mulf %16, %15 : vector<128x1024xf32>
    %18 = vector.broadcast %1 : f32 to vector<128x1024xf32>
    %19 = arith.mulf %18, %15 : vector<128x1024xf32>
    %cst = arith.constant 1.000000e+00 : f32
    %20 = vector.broadcast %cst : f32 to vector<128x1024xf32>
    %21 = arith.addf %20, %19 : vector<128x1024xf32>
    %22 = arith.select %10, %17, %21 : vector<128x1024xi1>, vector<128x1024xf32>
    %c0_2 = arith.constant 0 : index
    %c0_3 = arith.constant 0 : index
    %23 = vector.load %arg3[%c0_2, %c0_3] : memref<128x1024xf32, #tpu.memory_space<vmem>>, vector<128x1024xf32>
    tpu.vector_store %arg3[%c0_2, %c0_3], %22 {strides = array<i32>} : memref<128x1024xf32, #tpu.memory_space<vmem>>, vector<128x1024xf32>,
    return
  }
  func.func @transform_0(%arg0: i32) -> i32 {
    %c0_i32 = arith.constant 0 : i32
    %c0_i32_0 = arith.constant 0 : i32
    return %c0_i32 : i32
  }
  func.func @transform_1(%arg0: i32) -> (i32, i32) {
    %c0_i32 = arith.constant 0 : i32
    %c0_i32_0 = arith.constant 0 : i32
    return %arg0, %c0_i32 : i32, i32
  }
  func.func @transform_2(%arg0: i32) -> (i32, i32) {
    %c0_i32 = arith.constant 0 : i32
    %c0_i32_0 = arith.constant 0 : i32
    return %arg0, %c0_i32 : i32, i32
  }
}

</mosaic_0001>

<bundles_post_ra>
// kernel: tpu_custom_call.1
= control target key start
LH: loop header
LB: loop body
LE: loop exit
PB: predicated region body
PF: predicated region fallthrough
CT: control target
= control target key end

     0   :  { %7 = vsyncpa [#allocation5], 0  ;;  %s4174_s0 = inlined_call_operand.hbm [shape: f32[5], index: 0, kind: input, shape index: {}]   ;;  %s4175_s1 = inlined_call_operand.hbm [shape: f32[128,1024], index: 1, kind: input, shape index: {}]   ;;  %s4176_s2 = inlined_call_operand.hbm [shape: f32[128,1024], index: 2, kind: output, shape index: {}]  }
   0x1   :  { %8 = vsyncpa [#allocation3], 0 }
   0x2   :  { %9 = vsyncpa [#allocation4], 0  ;;  %s1994_s11 = scalar_lea.hbm %s4174_s0, 16 }
   0x3   :  { %p1995_p0 = scmp.ne.s32.totalorder %s4174_s0, %s1994_s11  ;;  %p1998_p1 = scmp.lt.u32.totalorder %s1994_s11, %s4174_s0 }
   0x5   :  { %p2000_p2 = pnand %p1998_p1, %p1995_p0 }
   0x7   :  { %2003 = shalt.err (!%p2000_p2)
}
   0x8   :  { %s2054_s16 = smov [#allocation2]   ;;  %s2055_s19 = smov [#allocation6]  }
   0x9   :  { %17 = dma.hbm_to_smem %s4174_s0, 16, %s2054_s16, [#allocation5]  }
   0xa   :  { %s23_s20 = sshll.u32 %s2055_s19, 4  ;;  %s2004_s23 = scalar_lea.hbm %s4175_s1, 16384  ;;  %s24_s20 = int_to_ptr.vmem [resolvable:$true] %s23_s20 }
   0xb   :  { %p2005_p3 = scmp.ne.s32.totalorder %s4175_s1, %s2004_s23  ;;  %p2008_p4 = scmp.lt.u32.totalorder %s2004_s23, %s4175_s1 }
   0xd   :  { %p2010_p5 = pnand %p2008_p4, %p2005_p3 }
   0xf   :  { %2013 = shalt.err (!%p2010_p5)
}
  0x10   :  { %s2014_s28 = scalar_lea.vmem %s24_s20, 16384  ;;  %p2019_p7 = scmp.lt.s32.totalorder %s24_s20, %s24_s20 }
  0x11   :  { %p2015_p6 = scmp.ne.s32.totalorder %s24_s20, %s2014_s28  ;;  %p2020_p8 = scmp.lt.s32.totalorder %s2014_s28, %s2014_s28 }
  0x13   :  { %p2021_p9 = por %p2020_p8, %p2019_p7 }
  0x15   :  { %p2022_p10 = pnand %p2021_p9, %p2015_p6 }
  0x17   :  { %2025 = shalt.err (!%p2022_p10)
}
  0x18   :  { %s2056_s0 = smov 1024   ;;  %s2057_s29 = smov 64  }
  0x19   :  { %29 = dma.hbm_to_vmem [thread:$0]  %s4175_s1, 16384, %s24_s20, [#allocation3], %s2056_s0, %s2056_s0, %s2057_s29  }
  0x1a   :  { %2048 = dma.done.wait [#allocation5], 16  }
  0x1b   :  { %2049 = vsyncadd [#allocation5], 4294967280 }
  0x1c   :  { %2050 = dma.done.wait [#allocation3], 16384  }
  0x1d   :  { %2051 = vsyncadd [#allocation3], 4294950912 }
  0x1e   :  { %36 = sfence }
  0x1f   :  { %s37_s4 = sld [smem:[#allocation2]]  ;;  %s1729_s5 = sld [smem:[#allocation2 + $0x1]]  ;;  %v2101_v0 = vld [vmem:[#allocation6] sm:$0xff]  ;;  %v2103_v1 = vld [vmem:[#allocation6 + $0x8] sm:$0xff]  ;;  %v2105_v2 = vld [vmem:[#allocation6 + $0x10] sm:$0xff] }
  0x20   :  { %s1730_s6 = sld [smem:[#allocation2 + $0x2]]  ;;  %s1731_s7 = sld [smem:[#allocation2 + $0x3]]  ;;  %v2123_v10 = vld [vmem:[#allocation6 + $0x18] sm:$0xff]  ;;  %v2125_v11 = vld [vmem:[#allocation6 + $0x20] sm:$0xff]  ;;  %v2154_v21 = vld [vmem:[#allocation6 + $0x28] sm:$0xff] }
  0x21   :  { %s1732_s8 = sld [smem:[#allocation2 + $0x4]]  ;;  %v2168_v29 = vld [vmem:[#allocation6 + $0x30] sm:$0xff]  ;;  %v2179_v37 = vld [vmem:[#allocation6 + $0x38] sm:$0xff]  ;;  %v2185_v40 = vld [vmem:[#allocation6 + $0x40] sm:$0xff]  ;;  %s2058_s1 = smov [#allocation7]  }
  0x22   :  { %v2194_v47 = vld [vmem:[#allocation6 + $0x48] sm:$0xff]  ;;  %v2202_v52 = vld [vmem:[#allocation6 + $0x50] sm:$0xff]  ;;  %v2216_v57 = vld [vmem:[#allocation6 + $0x58] sm:$0xff]  ;;  %s1716_s9 = sshll.u32 %s2058_s1, 4  ;;  %s1717_s9 = int_to_ptr.vmem [resolvable:$true] %s1716_s9 }
  0x23   :  { %s2026_s10 = scalar_lea.vmem %s1717_s9, 16384  ;;  %p2031_p12 = scmp.lt.s32.totalorder %s1717_s9, %s1717_s9 }
  0x24   :  { %p2027_p11 = scmp.ne.s32.totalorder %s1717_s9, %s2026_s10  ;;  %p2032_p13 = scmp.lt.s32.totalorder %s2026_s10, %s2026_s10 }
  0x25   :  { %v2111_v5 = vstv %s37_s4  ;;  %v2113_v6 = vstv %s1729_s5 }
  0x26   :  { %v2107_v3 = vstv %s1730_s6  ;;  %v2109_v4 = vstv %s1731_s7  ;;  %p2033_p0 = por %p2032_p13, %p2031_p12 }
  0x27   :  { %v171_v7 = vsub.f32 %v2101_v0, %v2107_v3  ;;  %vm427_vm0 = vcmp.lt.f32.partialorder %v2101_v0, %v2107_v3  ;;  %v2119_v8 = vstv %s1732_s8  ;;  %v172_v9 = vsub.f32 %v2103_v1, %v2107_v3 }
  0x28   :  { %v557_v12 = vsel %vm427_vm0, %v2109_v4, %v2119_v8  ;;  %vm428_vm1 = vcmp.lt.f32.partialorder %v2103_v1, %v2107_v3  ;;  %v173_v13 = vsub.f32 %v2105_v2, %v2107_v3  ;;  %vm429_vm2 = vcmp.lt.f32.partialorder %v2105_v2, %v2107_v3  ;;  %p2034_p1 = pnand %p2033_p0, %p2027_p11 }
  0x29   :  { %v299_v14 = vmul.f32 %v171_v7, %v171_v7  ;;  %v300_v15 = vmul.f32 %v172_v9, %v172_v9  ;;  %v558_v16 = vsel %vm428_vm1, %v2109_v4, %v2119_v8  ;;  %v559_v17 = vsel %vm429_vm2, %v2109_v4, %v2119_v8  ;;  %v2227_v7 = vld [vmem:[#allocation6 + $0x60] sm:$0xff] }
  0x2a   :  { %v301_v18 = vmul.f32 %v173_v13, %v173_v13  ;;  %v174_v19 = vsub.f32 %v2123_v10, %v2107_v3  ;;  %vm430_vm3 = vcmp.lt.f32.partialorder %v2123_v10, %v2107_v3  ;;  %v175_v20 = vsub.f32 %v2125_v11, %v2107_v3 }
  0x2b   :  { %v685_v22 = vmul.f32 %v557_v12, %v299_v14  ;;  %v686_v23 = vmul.f32 %v558_v16, %v300_v15  ;;  %v560_v24 = vsel %vm430_vm3, %v2109_v4, %v2119_v8  ;;  %vm431_vm4 = vcmp.lt.f32.partialorder %v2125_v11, %v2107_v3  ;;  %v2289_v11 = vld [vmem:[#allocation6 + $0x70] sm:$0xff] }
  0x2c   :  { %v687_v25 = vmul.f32 %v559_v17, %v301_v18  ;;  %v302_v26 = vmul.f32 %v174_v19, %v174_v19  ;;  %v303_v27 = vmul.f32 %v175_v20, %v175_v20  ;;  %v561_v28 = vsel %vm431_vm4, %v2109_v4, %v2119_v8 }
  0x2d   :  { %v813_v30 = vmul.f32 1.442695, %v685_v22  ;;  %v815_v31 = vmul.f32 1.442695, %v686_v23  ;;  %v176_v32 = vsub.f32 %v2154_v21, %v2107_v3  ;;  %vm432_vm5 = vcmp.lt.f32.partialorder %v2154_v21, %v2107_v3 }
  0x2e   :  { %v817_v33 = vmul.f32 1.442695, %v687_v25  ;;  %v688_v34 = vmul.f32 %v560_v24, %v302_v26  ;;  %v689_v35 = vmul.f32 %v561_v28, %v303_v27  ;;  %v562_v36 = vsel %vm432_vm5, %v2109_v4, %v2119_v8 }
  0x2f   :  { %1738 = vpow2.f32 %v813_v30  ;;  %v304_v38 = vmul.f32 %v176_v32, %v176_v32  ;;  %v177_v39 = vsub.f32 %v2168_v29, %v2107_v3  ;;  %vm433_vm6 = vcmp.lt.f32.partialorder %v2168_v29, %v2107_v3 }
  0x30   :  { %1740 = vpow2.f32 %v815_v31  ;;  %v819_v41 = vmul.f32 1.442695, %v688_v34  ;;  %v821_v42 = vmul.f32 1.442695, %v689_v35  ;;  %v563_v43 = vsel %vm433_vm6, %v2109_v4, %v2119_v8 }
  0x31   :  { %1742 = vpow2.f32 %v817_v33  ;;  %v690_v44 = vmul.f32 %v562_v36, %v304_v38  ;;  %v305_v45 = vmul.f32 %v177_v39, %v177_v39  ;;  %v178_v46 = vsub.f32 %v2179_v37, %v2107_v3 }
  0x32   :  { %1744 = vpow2.f32 %v819_v41  ;;  %vm434_vm7 = vcmp.lt.f32.partialorder %v2179_v37, %v2107_v3  ;;  %v179_v48 = vsub.f32 %v2185_v40, %v2107_v3  ;;  %vm435_vm8 = vcmp.lt.f32.partialorder %v2185_v40, %v2107_v3 }
  0x33   :  { %1746 = vpow2.f32 %v821_v42  ;;  %v823_v49 = vmul.f32 1.442695, %v690_v44  ;;  %v691_v50 = vmul.f32 %v563_v43, %v305_v45  ;;  %v306_v51 = vmul.f32 %v178_v46, %v178_v46 }
  0x34   :  { %v564_v53 = vsel %vm434_vm7, %v2109_v4, %v2119_v8  ;;  %v307_v54 = vmul.f32 %v179_v48, %v179_v48  ;;  %v565_v55 = vsel %vm435_vm8, %v2109_v4, %v2119_v8  ;;  %v180_v56 = vsub.f32 %v2194_v47, %v2107_v3 }
  0x35   :  { %1748 = vpow2.f32 %v823_v49  ;;  %v825_v58 = vmul.f32 1.442695, %v691_v50  ;;  %v692_v59 = vmul.f32 %v564_v53, %v306_v51  ;;  %vm436_vm9 = vcmp.lt.f32.partialorder %v2194_v47, %v2107_v3 }
  0x36   :  { %v693_v60 = vmul.f32 %v565_v55, %v307_v54  ;;  %v308_v61 = vmul.f32 %v180_v56, %v180_v56  ;;  %v566_v62 = vsel %vm436_vm9, %v2109_v4, %v2119_v8  ;;  %v181_v63 = vsub.f32 %v2202_v52, %v2107_v3  ;;  %v2268_v55 = vld [vmem:[#allocation6 + $0x68] sm:$0xff] }
  0x37   :  { %1750 = vpow2.f32 %v825_v58  ;;  %v827_v9 = vmul.f32 1.442695, %v692_v59  ;;  %vm437_vm10 = vcmp.lt.f32.partialorder %v2202_v52, %v2107_v3  ;;  %v182_v12 = vsub.f32 %v2216_v57, %v2107_v3 }
  0x38   :  { %v829_v13 = vmul.f32 1.442695, %v693_v60  ;;  %v694_v14 = vmul.f32 %v566_v62, %v308_v61  ;;  %v309_v15 = vmul.f32 %v181_v63, %v181_v63  ;;  %v567_v16 = vsel %vm437_vm10, %v2109_v4, %v2119_v8 }
  0x39   :  { %v1739_v17 = vpop.eup %1738  ;;  %1752 = vpow2.f32 %v827_v9  ;;  %v310_v18 = vmul.f32 %v182_v12, %v182_v12  ;;  %vm438_vm11 = vcmp.lt.f32.partialorder %v2216_v57, %v2107_v3  ;;  %v183_v19 = vsub.f32 %v2227_v7, %v2107_v3 }
  0x3a   :  { %v1741_v20 = vpop.eup %1740  ;;  %v1070_v22 = vmul.f32 %v1739_v17, %v2111_v5  ;;  %v1199_v23 = vmul.f32 %v1739_v17, %v2113_v6  ;;  %1754 = vpow2.f32 %v829_v13  ;;  %v831_v24 = vmul.f32 1.442695, %v694_v14 }
  0x3b   :  { %v1743_v25 = vpop.eup %1742  ;;  %v1071_v26 = vmul.f32 %v1741_v20, %v2111_v5  ;;  %v1200_v27 = vmul.f32 %v1741_v20, %v2113_v6  ;;  %v695_v28 = vmul.f32 %v567_v16, %v309_v15  ;;  %v568_v30 = vsel %vm438_vm11, %v2109_v4, %v2119_v8 }
  0x3c   :  { %v1745_v31 = vpop.eup %1744  ;;  %v1327_v32 = vadd.f32 1.0, %v1199_v23  ;;  %v1072_v33 = vmul.f32 %v1743_v25, %v2111_v5  ;;  %v1201_v34 = vmul.f32 %v1743_v25, %v2113_v6  ;;  %1756 = vpow2.f32 %v831_v24 }
  0x3d   :  { %v1747_v35 = vpop.eup %1746  ;;  %v1328_v36 = vadd.f32 1.0, %v1200_v27  ;;  %v1073_v38 = vmul.f32 %v1745_v31, %v2111_v5  ;;  %v1202_v39 = vmul.f32 %v1745_v31, %v2113_v6  ;;  %v833_v41 = vmul.f32 1.442695, %v695_v28 }
  0x3e   :  { %v1455_v42 = vsel %vm427_vm0, %v1070_v22, %v1327_v32  ;;  %v1329_v43 = vadd.f32 1.0, %v1201_v34  ;;  %v1074_v44 = vmul.f32 %v1747_v35, %v2111_v5  ;;  %v1203_v45 = vmul.f32 %v1747_v35, %v2113_v6  ;;  %v2317_v34 = vld [vmem:[#allocation6 + $0x80] sm:$0xff] }
  0x3f   :  { %v1749_v46 = vpop.eup %1748  ;;  %1583 = vst [vmem:[#allocation7] sm:$0xff] %v1455_v42  ;;  %v1456_v48 = vsel %vm428_vm1, %v1071_v26, %v1328_v36  ;;  %v1330_v49 = vadd.f32 1.0, %v1202_v39  ;;  %1758 = vpow2.f32 %v833_v41  ;;  %v696_v50 = vmul.f32 %v568_v30, %v310_v18 }
  0x40   :  { %1584 = vst [vmem:[#allocation7 + $0x8] sm:$0xff] %v1456_v48  ;;  %v1457_v0 = vsel %vm429_vm2, %v1072_v33, %v1329_v43  ;;  %v1331_v51 = vadd.f32 1.0, %v1203_v45  ;;  %v1075_v53 = vmul.f32 %v1749_v46, %v2111_v5  ;;  %v1204_v54 = vmul.f32 %v1749_v46, %v2113_v6  ;;  %v2315_v33 = vld [vmem:[#allocation6 + $0x78] sm:$0xff] }
  0x41   :  { %v1751_v56 = vpop.eup %1750  ;;  %1585 = vst [vmem:[#allocation7 + $0x10] sm:$0xff] %v1457_v0  ;;  %v1458_v1 = vsel %vm430_vm3, %v1073_v38, %v1330_v49  ;;  %v835_v58 = vmul.f32 1.442695, %v696_v50  ;;  %v311_v59 = vmul.f32 %v183_v19, %v183_v19  ;;  %vm439_vm12 = vcmp.lt.f32.partialorder %v2227_v7, %v2107_v3 }
  0x42   :  { %1586 = vst [vmem:[#allocation7 + $0x18] sm:$0xff] %v1458_v1  ;;  %v1459_v2 = vsel %vm431_vm4, %v1074_v44, %v1331_v51  ;;  %v1332_v60 = vadd.f32 1.0, %v1204_v54  ;;  %v1076_v61 = vmul.f32 %v1751_v56, %v2111_v5  ;;  %v1205_v62 = vmul.f32 %v1751_v56, %v2113_v6  ;;  %v2329_v44 = vld [vmem:[#allocation6 + $0x88] sm:$0xff]  ;;  %v2349_v54 = vld [vmem:[#allocation6 + $0x90] sm:$0xff] }
  0x43   :  { %v1753_v63 = vpop.eup %1752  ;;  %1587 = vst [vmem:[#allocation7 + $0x20] sm:$0xff] %v1459_v2  ;;  %1760 = vpow2.f32 %v835_v58  ;;  %v569_v10 = vsel %vm439_vm12, %v2109_v4, %v2119_v8  ;;  %v184_v9 = vsub.f32 %v2268_v55, %v2107_v3  ;;  %vm440_vm13 = vcmp.lt.f32.partialorder %v2268_v55, %v2107_v3 }
  0x44   :  { %v1755_v12 = vpop.eup %1754  ;;  %v1460_v13 = vsel %vm432_vm5, %v1075_v53, %v1332_v60  ;;  %v1333_v14 = vadd.f32 1.0, %v1205_v62  ;;  %v1077_v15 = vmul.f32 %v1753_v63, %v2111_v5  ;;  %v1206_v16 = vmul.f32 %v1753_v63, %v2113_v6 }
  0x45   :  { %1588 = vst [vmem:[#allocation7 + $0x28] sm:$0xff] %v1460_v13  ;;  %v1078_v17 = vmul.f32 %v1755_v12, %v2111_v5  ;;  %v1207_v18 = vmul.f32 %v1755_v12, %v2113_v6  ;;  %v697_v19 = vmul.f32 %v569_v10, %v311_v59  ;;  %v312_v20 = vmul.f32 %v184_v9, %v184_v9  ;;  %v2356_v59 = vld [vmem:[#allocation6 + $0x98] sm:$0xff] }
  0x46   :  { %v1757_v22 = vpop.eup %1756  ;;  %v1461_v23 = vsel %vm433_vm6, %v1076_v61, %v1333_v14  ;;  %v1334_v24 = vadd.f32 1.0, %v1206_v16  ;;  %v570_v21 = vsel %vm440_vm13, %v2109_v4, %v2119_v8  ;;  %v185_v25 = vsub.f32 %v2289_v11, %v2107_v3 }
  0x47   :  { %1589 = vst [vmem:[#allocation7 + $0x30] sm:$0xff] %v1461_v23  ;;  %v1335_v26 = vadd.f32 1.0, %v1207_v18  ;;  %v1079_v27 = vmul.f32 %v1757_v22, %v2111_v5  ;;  %v1208_v28 = vmul.f32 %v1757_v22, %v2113_v6  ;;  %v837_v30 = vmul.f32 1.442695, %v697_v19  ;;  %v2384_v18 = vld [vmem:[#allocation6 + $0xa0] sm:$0xff] }
  0x48   :  { %v1462_v29 = vsel %vm434_vm7, %v1077_v15, %v1334_v24  ;;  %v698_v31 = vmul.f32 %v570_v21, %v312_v20  ;;  %v313_v32 = vmul.f32 %v185_v25, %v185_v25  ;;  %vm441_vm14 = vcmp.lt.f32.partialorder %v2289_v11, %v2107_v3  ;;  %v2390_v21 = vld [vmem:[#allocation6 + $0xa8] sm:$0xff] }
  0x49   :  { %v1759_v35 = vpop.eup %1758  ;;  %1590 = vst [vmem:[#allocation7 + $0x38] sm:$0xff] %v1462_v29  ;;  %v1463_v36 = vsel %vm435_vm8, %v1078_v17, %v1335_v26  ;;  %v1336_v38 = vadd.f32 1.0, %v1208_v28  ;;  %1762 = vpow2.f32 %v837_v30  ;;  %v571_v37 = vsel %vm441_vm14, %v2109_v4, %v2119_v8 }
  0x4a   :  { %1591 = vst [vmem:[#allocation7 + $0x40] sm:$0xff] %v1463_v36  ;;  %v1080_v39 = vmul.f32 %v1759_v35, %v2111_v5  ;;  %v1209_v41 = vmul.f32 %v1759_v35, %v2113_v6  ;;  %v839_v42 = vmul.f32 1.442695, %v698_v31  ;;  %v699_v43 = vmul.f32 %v571_v37, %v313_v32  ;;  %v2410_v37 = vld [vmem:[#allocation6 + $0xb0] sm:$0xff] }
  0x4b   :  { %v1464_v40 = vsel %vm436_vm9, %v1079_v27, %v1336_v38  ;;  %v186_v45 = vsub.f32 %v2315_v33, %v2107_v3  ;;  %vm442_vm15 = vcmp.lt.f32.partialorder %v2315_v33, %v2107_v3  ;;  %v187_v46 = vsub.f32 %v2317_v34, %v2107_v3 }
  0x4c   :  { %1592 = vst [vmem:[#allocation7 + $0x48] sm:$0xff] %v1464_v40  ;;  %v1337_v48 = vadd.f32 1.0, %v1209_v41  ;;  %1764 = vpow2.f32 %v839_v42  ;;  %v841_v49 = vmul.f32 1.442695, %v699_v43  ;;  %v572_v47 = vsel %vm442_vm15, %v2109_v4, %v2119_v8 }
  0x4d   :  { %v1761_v50 = vpop.eup %1760  ;;  %v314_v0 = vmul.f32 %v186_v45, %v186_v45  ;;  %v315_v51 = vmul.f32 %v187_v46, %v187_v46  ;;  %vm443_vm0 = vcmp.lt.f32.partialorder %v2317_v34, %v2107_v3  ;;  %v188_v53 = vsub.f32 %v2329_v44, %v2107_v3 }
  0x4e   :  { %v1465_v56 = vsel %vm437_vm10, %v1080_v39, %v1337_v48  ;;  %v1081_v1 = vmul.f32 %v1761_v50, %v2111_v5  ;;  %v1210_v58 = vmul.f32 %v1761_v50, %v2113_v6  ;;  %1766 = vpow2.f32 %v841_v49  ;;  %v2419_v48 = vld [vmem:[#allocation6 + $0xb8] sm:$0xff]  ;;  %v2428_v50 = vld [vmem:[#allocation6 + $0xc0] sm:$0xff] }
  0x4f   :  { %1593 = vst [vmem:[#allocation7 + $0x50] sm:$0xff] %v1465_v56  ;;  %v700_v2 = vmul.f32 %v572_v47, %v314_v0  ;;  %v573_v60 = vsel %vm443_vm0, %v2109_v4, %v2119_v8  ;;  %v316_v61 = vmul.f32 %v188_v53, %v188_v53  ;;  %vm444_vm1 = vcmp.lt.f32.partialorder %v2329_v44, %v2107_v3 }
  0x50   :  { %v1338_v52 = vadd.f32 1.0, %v1210_v58  ;;  %v701_v62 = vmul.f32 %v573_v60, %v315_v51  ;;  %v574_v63 = vsel %vm444_vm1, %v2109_v4, %v2119_v8  ;;  %v189_v10 = vsub.f32 %v2349_v54, %v2107_v3 }
  0x51   :  { %v843_v9 = vmul.f32 1.442695, %v700_v2  ;;  %v702_v12 = vmul.f32 %v574_v63, %v316_v61  ;;  %vm445_vm2 = vcmp.lt.f32.partialorder %v2349_v54, %v2107_v3  ;;  %v190_v13 = vsub.f32 %v2356_v59, %v2107_v3 }
  0x52   :  { %v1466_v14 = vsel %vm438_vm11, %v1081_v1, %v1338_v52  ;;  %v845_v15 = vmul.f32 1.442695, %v701_v62  ;;  %v317_v16 = vmul.f32 %v189_v10, %v189_v10  ;;  %v575_v17 = vsel %vm445_vm2, %v2109_v4, %v2119_v8 }
  0x53   :  { %v1763_v19 = vpop.eup %1762  ;;  %1594 = vst [vmem:[#allocation7 + $0x58] sm:$0xff] %v1466_v14  ;;  %1768 = vpow2.f32 %v843_v9  ;;  %v847_v20 = vmul.f32 1.442695, %v702_v12  ;;  %v318_v22 = vmul.f32 %v190_v13, %v190_v13  ;;  %vm446_vm3 = vcmp.lt.f32.partialorder %v2356_v59, %v2107_v3  ;;  %v2518_v59 = vld [vmem:[#allocation6 + $0xe8] sm:$0xff] }
  0x54   :  { %v1082_v57 = vmul.f32 %v1763_v19, %v2111_v5  ;;  %v1211_v23 = vmul.f32 %v1763_v19, %v2113_v6  ;;  %1770 = vpow2.f32 %v845_v15  ;;  %v703_v24 = vmul.f32 %v575_v17, %v317_v16  ;;  %v2458_v16 = vld [vmem:[#allocation6 + $0xc8] sm:$0xff] }
  0x55   :  { %1772 = vpow2.f32 %v847_v20  ;;  %v576_v25 = vsel %vm446_vm3, %v2109_v4, %v2119_v8  ;;  %v191_v26 = vsub.f32 %v2384_v18, %v2107_v3  ;;  %vm447_vm4 = vcmp.lt.f32.partialorder %v2384_v18, %v2107_v3 }
  0x56   :  { %v1765_v27 = vpop.eup %1764  ;;  %v1339_v28 = vadd.f32 1.0, %v1211_v23  ;;  %v849_v30 = vmul.f32 1.442695, %v703_v24  ;;  %v704_v29 = vmul.f32 %v576_v25, %v318_v22  ;;  %v577_v31 = vsel %vm447_vm4, %v2109_v4, %v2119_v8 }
  0x57   :  { %v1083_v32 = vmul.f32 %v1765_v27, %v2111_v5  ;;  %v1212_v35 = vmul.f32 %v1765_v27, %v2113_v6  ;;  %v319_v36 = vmul.f32 %v191_v26, %v191_v26  ;;  %v192_v38 = vsub.f32 %v2390_v21, %v2107_v3 }
  0x58   :  { %v1767_v39 = vpop.eup %1766  ;;  %v1467_v41 = vsel %vm439_vm12, %v1082_v57, %v1339_v28  ;;  %1774 = vpow2.f32 %v849_v30  ;;  %v851_v42 = vmul.f32 1.442695, %v704_v29  ;;  %vm448_vm5 = vcmp.lt.f32.partialorder %v2390_v21, %v2107_v3  ;;  %v2552_v21 = vld [vmem:[#allocation6 + $0xf8] sm:$0xff] }
  0x59   :  { %1595 = vst [vmem:[#allocation7 + $0x60] sm:$0xff] %v1467_v41  ;;  %v1340_v43 = vadd.f32 1.0, %v1212_v35  ;;  %v1084_v40 = vmul.f32 %v1767_v39, %v2111_v5  ;;  %v1213_v45 = vmul.f32 %v1767_v39, %v2113_v6  ;;  %v705_v46 = vmul.f32 %v577_v31, %v319_v36 }
  0x5a   :  { %1776 = vpow2.f32 %v851_v42  ;;  %v320_v49 = vmul.f32 %v192_v38, %v192_v38  ;;  %v578_v7 = vsel %vm448_vm5, %v2109_v4, %v2119_v8  ;;  %v193_v47 = vsub.f32 %v2410_v37, %v2107_v3 }
  0x5b   :  { %v1468_v0 = vsel %vm440_vm13, %v1083_v32, %v1340_v43  ;;  %v1341_v51 = vadd.f32 1.0, %v1213_v45  ;;  %v853_v53 = vmul.f32 1.442695, %v705_v46  ;;  %vm449_vm6 = vcmp.lt.f32.partialorder %v2410_v37, %v2107_v3  ;;  %v2474_v32 = vld [vmem:[#allocation6 + $0xd0] sm:$0xff] }
  0x5c   :  { %1596 = vst [vmem:[#allocation7 + $0x68] sm:$0xff] %v1468_v0  ;;  %v706_v56 = vmul.f32 %v578_v7, %v320_v49  ;;  %v321_v1 = vmul.f32 %v193_v47, %v193_v47  ;;  %v579_v58 = vsel %vm449_vm6, %v2109_v4, %v2119_v8  ;;  %v194_v2 = vsub.f32 %v2419_v48, %v2107_v3 }
  0x5d   :  { %v1769_v60 = vpop.eup %1768  ;;  %v1469_v55 = vsel %vm441_vm14, %v1084_v40, %v1341_v51  ;;  %1778 = vpow2.f32 %v853_v53  ;;  %vm450_vm7 = vcmp.lt.f32.partialorder %v2419_v48, %v2107_v3  ;;  %v195_v61 = vsub.f32 %v2428_v50, %v2107_v3  ;;  %v2492_v40 = vld [vmem:[#allocation6 + $0xd8] sm:$0xff] }
  0x5e   :  { %v1771_v52 = vpop.eup %1770  ;;  %1597 = vst [vmem:[#allocation7 + $0x70] sm:$0xff] %v1469_v55  ;;  %v1085_v62 = vmul.f32 %v1769_v60, %v2111_v5  ;;  %v1214_v63 = vmul.f32 %v1769_v60, %v2113_v6  ;;  %v855_v10 = vmul.f32 1.442695, %v706_v56  ;;  %v707_v9 = vmul.f32 %v579_v58, %v321_v1 }
  0x5f   :  { %v1773_v12 = vpop.eup %1772  ;;  %v1086_v13 = vmul.f32 %v1771_v52, %v2111_v5  ;;  %v1215_v11 = vmul.f32 %v1771_v52, %v2113_v6  ;;  %v322_v14 = vmul.f32 %v194_v2, %v194_v2  ;;  %v580_v15 = vsel %vm450_vm7, %v2109_v4, %v2119_v8  ;;  %v2514_v2 = vld [vmem:[#allocation6 + $0xe0] sm:$0xff] }
  0x60   :  { %v1342_v17 = vadd.f32 1.0, %v1214_v63  ;;  %v1087_v19 = vmul.f32 %v1773_v12, %v2111_v5  ;;  %v1216_v20 = vmul.f32 %v1773_v12, %v2113_v6  ;;  %1780 = vpow2.f32 %v855_v10 }
  0x61   :  { %v1343_v22 = vadd.f32 1.0, %v1215_v11  ;;  %v857_v57 = vmul.f32 1.442695, %v707_v9  ;;  %v708_v23 = vmul.f32 %v580_v15, %v322_v14  ;;  %v323_v24 = vmul.f32 %v195_v61, %v195_v61 }
  0x62   :  { %v1775_v25 = vpop.eup %1774  ;;  %v1470_v26 = vsel %vm442_vm15, %v1085_v62, %v1342_v17  ;;  %v1344_v27 = vadd.f32 1.0, %v1216_v20  ;;  %vm451_vm8 = vcmp.lt.f32.partialorder %v2428_v50, %v2107_v3  ;;  %v196_v28 = vsub.f32 %v2458_v16, %v2107_v3  ;;  %v2536_v20 = vld [vmem:[#allocation6 + $0xf0] sm:$0xff] }
  0x63   :  { %1598 = vst [vmem:[#allocation7 + $0x78] sm:$0xff] %v1470_v26  ;;  %v1471_v30 = vsel %vm443_vm0, %v1086_v13, %v1343_v22  ;;  %v1088_v29 = vmul.f32 %v1775_v25, %v2111_v5  ;;  %v1217_v31 = vmul.f32 %v1775_v25, %v2113_v6  ;;  %1782 = vpow2.f32 %v857_v57 }
  0x64   :  { %v1777_v33 = vpop.eup %1776  ;;  %1599 = vst [vmem:[#allocation7 + $0x80] sm:$0xff] %v1471_v30  ;;  %v1472_v35 = vsel %vm444_vm1, %v1087_v19, %v1344_v27  ;;  %v859_v36 = vmul.f32 1.442695, %v708_v23  ;;  %v581_v34 = vsel %vm451_vm8, %v2109_v4, %v2119_v8  ;;  %v324_v38 = vmul.f32 %v196_v28, %v196_v28 }
  0x65   :  { %1600 = vst [vmem:[#allocation7 + $0x88] sm:$0xff] %v1472_v35  ;;  %v1345_v39 = vadd.f32 1.0, %v1217_v31  ;;  %v1089_v41 = vmul.f32 %v1777_v33, %v2111_v5  ;;  %v1218_v42 = vmul.f32 %v1777_v33, %v2113_v6  ;;  %v709_v43 = vmul.f32 %v581_v34, %v323_v24 }
  0x66   :  { %1784 = vpow2.f32 %v859_v36  ;;  %vm452_vm9 = vcmp.lt.f32.partialorder %v2458_v16, %v2107_v3  ;;  %v197_v44 = vsub.f32 %v2474_v32, %v2107_v3  ;;  %vm453_vm10 = vcmp.lt.f32.partialorder %v2474_v32, %v2107_v3 }
  0x67   :  { %v1779_v45 = vpop.eup %1778  ;;  %v1473_v46 = vsel %vm445_vm2, %v1088_v29, %v1345_v39  ;;  %v1346_v49 = vadd.f32 1.0, %v1218_v42  ;;  %v861_v7 = vmul.f32 1.442695, %v709_v43  ;;  %v582_v47 = vsel %vm452_vm9, %v2109_v4, %v2119_v8 }
  0x68   :  { %1601 = vst [vmem:[#allocation7 + $0x90] sm:$0xff] %v1473_v46  ;;  %v1090_v0 = vmul.f32 %v1779_v45, %v2111_v5  ;;  %v1219_v51 = vmul.f32 %v1779_v45, %v2113_v6  ;;  %v710_v53 = vmul.f32 %v582_v47, %v324_v38  ;;  %v325_v56 = vmul.f32 %v197_v44, %v197_v44  ;;  %v2570_v44 = vld [vmem:[#allocation6 + $0x100] sm:$0xff] }
  0x69   :  { %v1474_v54 = vsel %vm446_vm3, %v1089_v41, %v1346_v49  ;;  %1786 = vpow2.f32 %v861_v7  ;;  %v583_v1 = vsel %vm453_vm10, %v2109_v4, %v2119_v8  ;;  %v198_v58 = vsub.f32 %v2492_v40, %v2107_v3 }
  0x6a   :  { %v1781_v60 = vpop.eup %1780  ;;  %1602 = vst [vmem:[#allocation7 + $0x98] sm:$0xff] %v1474_v54  ;;  %v1347_v55 = vadd.f32 1.0, %v1219_v51  ;;  %v863_v61 = vmul.f32 1.442695, %v710_v53  ;;  %v711_v52 = vmul.f32 %v583_v1, %v325_v56  ;;  %vm454_vm11 = vcmp.lt.f32.partialorder %v2492_v40, %v2107_v3 }
  0x6b   :  { %v1091_v62 = vmul.f32 %v1781_v60, %v2111_v5  ;;  %v1220_v63 = vmul.f32 %v1781_v60, %v2113_v6  ;;  %v326_v10 = vmul.f32 %v198_v58, %v198_v58  ;;  %v584_v9 = vsel %vm454_vm11, %v2109_v4, %v2119_v8  ;;  %v2593_v60 = vld [vmem:[#allocation6 + $0x108] sm:$0xff] }
  0x6c   :  { %v1475_v12 = vsel %vm447_vm4, %v1090_v0, %v1347_v55  ;;  %1788 = vpow2.f32 %v863_v61  ;;  %v865_v13 = vmul.f32 1.442695, %v711_v52  ;;  %v199_v11 = vsub.f32 %v2514_v2, %v2107_v3 }
  0x6d   :  { %v1783_v14 = vpop.eup %1782  ;;  %1603 = vst [vmem:[#allocation7 + $0xa0] sm:$0xff] %v1475_v12  ;;  %v1348_v15 = vadd.f32 1.0, %v1220_v63  ;;  %v712_v17 = vmul.f32 %v584_v9, %v326_v10  ;;  %vm455_vm12 = vcmp.lt.f32.partialorder %v2514_v2, %v2107_v3  ;;  %v200_v19 = vsub.f32 %v2518_v59, %v2107_v3 }
  0x6e   :  { %v1092_v18 = vmul.f32 %v1783_v14, %v2111_v5  ;;  %v1221_v22 = vmul.f32 %v1783_v14, %v2113_v6  ;;  %1790 = vpow2.f32 %v865_v13  ;;  %v327_v57 = vmul.f32 %v199_v11, %v199_v11  ;;  %v2609_v14 = vld [vmem:[#allocation6 + $0x110] sm:$0xff] }
  0x6f   :  { %v1476_v23 = vsel %vm448_vm5, %v1091_v62, %v1348_v15  ;;  %v867_v24 = vmul.f32 1.442695, %v712_v17  ;;  %v585_v25 = vsel %vm455_vm12, %v2109_v4, %v2119_v8  ;;  %v328_v26 = vmul.f32 %v200_v19, %v200_v19  ;;  %v2611_v15 = vld [vmem:[#allocation6 + $0x118] sm:$0xff] }
  0x70   :  { %v1785_v27 = vpop.eup %1784  ;;  %1604 = vst [vmem:[#allocation7 + $0xa8] sm:$0xff] %v1476_v23  ;;  %v1349_v28 = vadd.f32 1.0, %v1221_v22  ;;  %v713_v30 = vmul.f32 %v585_v25, %v327_v57  ;;  %vm456_vm13 = vcmp.lt.f32.partialorder %v2518_v59, %v2107_v3  ;;  %v201_v29 = vsub.f32 %v2536_v20, %v2107_v3 }
  0x71   :  { %v1093_v31 = vmul.f32 %v1785_v27, %v2111_v5  ;;  %v1222_v33 = vmul.f32 %v1785_v27, %v2113_v6  ;;  %1792 = vpow2.f32 %v867_v24  ;;  %v586_v35 = vsel %vm456_vm13, %v2109_v4, %v2119_v8 }
  0x72   :  { %v1477_v36 = vsel %vm449_vm6, %v1092_v18, %v1349_v28  ;;  %v869_v34 = vmul.f32 1.442695, %v713_v30  ;;  %v714_v38 = vmul.f32 %v586_v35, %v328_v26  ;;  %v329_v39 = vmul.f32 %v201_v29, %v201_v29  ;;  %v2632_v28 = vld [vmem:[#allocation6 + $0x120] sm:$0xff] }
  0x73   :  { %v1787_v41 = vpop.eup %1786  ;;  %1605 = vst [vmem:[#allocation7 + $0xb0] sm:$0xff] %v1477_v36  ;;  %v1350_v42 = vadd.f32 1.0, %v1222_v33  ;;  %vm457_vm14 = vcmp.lt.f32.partialorder %v2536_v20, %v2107_v3  ;;  %v202_v43 = vsub.f32 %v2552_v21, %v2107_v3  ;;  %vm458_vm15 = vcmp.lt.f32.partialorder %v2552_v21, %v2107_v3 }
  0x74   :  { %v1094_v37 = vmul.f32 %v1787_v41, %v2111_v5  ;;  %v1223_v45 = vmul.f32 %v1787_v41, %v2113_v6  ;;  %1794 = vpow2.f32 %v869_v34  ;;  %v871_v46 = vmul.f32 1.442695, %v714_v38 }
  0x75   :  { %v1478_v49 = vsel %vm450_vm7, %v1093_v31, %v1350_v42  ;;  %v587_v7 = vsel %vm457_vm14, %v2109_v4, %v2119_v8  ;;  %v330_v47 = vmul.f32 %v202_v43, %v202_v43  ;;  %v588_v0 = vsel %vm458_vm15, %v2109_v4, %v2119_v8 }
  0x76   :  { %v1789_v51 = vpop.eup %1788  ;;  %1606 = vst [vmem:[#allocation7 + $0xb8] sm:$0xff] %v1478_v49  ;;  %v1351_v53 = vadd.f32 1.0, %v1223_v45  ;;  %1796 = vpow2.f32 %v871_v46  ;;  %v715_v56 = vmul.f32 %v587_v7, %v329_v39  ;;  %v203_v48 = vsub.f32 %v2570_v44, %v2107_v3  ;;  %v2650_v49 = vld [vmem:[#allocation6 + $0x128] sm:$0xff]  ;;  %v2652_v7 = vld [vmem:[#allocation6 + $0x130] sm:$0xff] }
  0x77   :  { %v1095_v54 = vmul.f32 %v1789_v51, %v2111_v5  ;;  %v1224_v1 = vmul.f32 %v1789_v51, %v2113_v6  ;;  %v716_v58 = vmul.f32 %v588_v0, %v330_v47  ;;  %vm459_vm0 = vcmp.lt.f32.partialorder %v2570_v44, %v2107_v3 }
  0x78   :  { %v1791_v55 = vpop.eup %1790  ;;  %v1479_v61 = vsel %vm451_vm8, %v1094_v37, %v1351_v53  ;;  %v873_v52 = vmul.f32 1.442695, %v715_v56  ;;  %v331_v62 = vmul.f32 %v203_v48, %v203_v48  ;;  %v589_v63 = vsel %vm459_vm0, %v2109_v4, %v2119_v8 }
  0x79   :  { %1607 = vst [vmem:[#allocation7 + $0xc0] sm:$0xff] %v1479_v61  ;;  %v1352_v10 = vadd.f32 1.0, %v1224_v1  ;;  %v1096_v9 = vmul.f32 %v1791_v55, %v2111_v5  ;;  %v1225_v12 = vmul.f32 %v1791_v55, %v2113_v6  ;;  %v875_v13 = vmul.f32 1.442695, %v716_v58 }
  0x7a   :  { %1798 = vpow2.f32 %v873_v52  ;;  %v717_v11 = vmul.f32 %v589_v63, %v331_v62  ;;  %v204_v50 = vsub.f32 %v2593_v60, %v2107_v3  ;;  %vm460_vm1 = vcmp.lt.f32.partialorder %v2593_v60, %v2107_v3 }
  0x7b   :  { %v1793_v17 = vpop.eup %1792  ;;  %v1480_v19 = vsel %vm452_vm9, %v1095_v54, %v1352_v10  ;;  %v1353_v18 = vadd.f32 1.0, %v1225_v12  ;;  %1800 = vpow2.f32 %v875_v13  ;;  %v590_v22 = vsel %vm460_vm1, %v2109_v4, %v2119_v8 }
  0x7c   :  { %1608 = vst [vmem:[#allocation7 + $0xc8] sm:$0xff] %v1480_v19  ;;  %v1097_v57 = vmul.f32 %v1793_v17, %v2111_v5  ;;  %v1226_v23 = vmul.f32 %v1793_v17, %v2113_v6  ;;  %v877_v24 = vmul.f32 1.442695, %v717_v11  ;;  %v332_v25 = vmul.f32 %v204_v50, %v204_v50  ;;  %v2687_v50 = vld [vmem:[#allocation6 + $0x138] sm:$0xff] }
  0x7d   :  { %v1481_v16 = vsel %vm453_vm10, %v1096_v9, %v1353_v18  ;;  %v205_v26 = vsub.f32 %v2609_v14, %v2107_v3  ;;  %vm461_vm2 = vcmp.lt.f32.partialorder %v2609_v14, %v2107_v3  ;;  %v206_v27 = vsub.f32 %v2611_v15, %v2107_v3 }
  0x7e   :  { %v1795_v30 = vpop.eup %1794  ;;  %1609 = vst [vmem:[#allocation7 + $0xd0] sm:$0xff] %v1481_v16  ;;  %v1354_v29 = vadd.f32 1.0, %v1226_v23  ;;  %1802 = vpow2.f32 %v877_v24  ;;  %v718_v31 = vmul.f32 %v590_v22, %v332_v25  ;;  %v591_v32 = vsel %vm461_vm2, %v2109_v4, %v2119_v8  ;;  %v2696_v25 = vld [vmem:[#allocation6 + $0x140] sm:$0xff] }
  0x7f   :  { %v1098_v33 = vmul.f32 %v1795_v30, %v2111_v5  ;;  %v1227_v35 = vmul.f32 %v1795_v30, %v2113_v6  ;;  %v333_v36 = vmul.f32 %v205_v26, %v205_v26  ;;  %v334_v34 = vmul.f32 %v206_v27, %v206_v27 }
  0x80   :  { %v1797_v38 = vpop.eup %1796  ;;  %v1482_v39 = vsel %vm454_vm11, %v1097_v57, %v1354_v29  ;;  %v879_v41 = vmul.f32 1.442695, %v718_v31  ;;  %vm462_vm3 = vcmp.lt.f32.partialorder %v2611_v15, %v2107_v3  ;;  %v207_v42 = vsub.f32 %v2632_v28, %v2107_v3 }
  0x81   :  { %1610 = vst [vmem:[#allocation7 + $0xd8] sm:$0xff] %v1482_v39  ;;  %v1355_v43 = vadd.f32 1.0, %v1227_v35  ;;  %v1099_v37 = vmul.f32 %v1797_v38, %v2111_v5  ;;  %v1228_v45 = vmul.f32 %v1797_v38, %v2113_v6  ;;  %v719_v46 = vmul.f32 %v591_v32, %v333_v36  ;;  %v2719_v35 = vld [vmem:[#allocation6 + $0x148] sm:$0xff]  ;;  %v2721_v36 = vld [vmem:[#allocation6 + $0x150] sm:$0xff] }
  0x82   :  { %1804 = vpow2.f32 %v879_v41  ;;  %v592_v40 = vsel %vm462_vm3, %v2109_v4, %v2119_v8  ;;  %v335_v47 = vmul.f32 %v207_v42, %v207_v42  ;;  %vm463_vm4 = vcmp.lt.f32.partialorder %v2632_v28, %v2107_v3 }
  0x83   :  { %v1483_v0 = vsel %vm455_vm12, %v1098_v33, %v1355_v43  ;;  %v1356_v51 = vadd.f32 1.0, %v1228_v45  ;;  %v881_v53 = vmul.f32 1.442695, %v719_v46  ;;  %v720_v56 = vmul.f32 %v592_v40, %v334_v34 }
  0x84   :  { %v1799_v48 = vpop.eup %1798  ;;  %1611 = vst [vmem:[#allocation7 + $0xe0] sm:$0xff] %v1483_v0  ;;  %v593_v54 = vsel %vm463_vm4, %v2109_v4, %v2119_v8  ;;  %v208_v1 = vsub.f32 %v2650_v49, %v2107_v3  ;;  %vm464_vm5 = vcmp.lt.f32.partialorder %v2650_v49, %v2107_v3  ;;  %v209_v2 = vsub.f32 %v2652_v7, %v2107_v3 }
  0x85   :  { %v1801_v58 = vpop.eup %1800  ;;  %v1484_v55 = vsel %vm456_vm13, %v1099_v37, %v1356_v51  ;;  %v1100_v61 = vmul.f32 %v1799_v48, %v2111_v5  ;;  %v1229_v52 = vmul.f32 %v1799_v48, %v2113_v6  ;;  %1806 = vpow2.f32 %v881_v53 }
  0x86   :  { %1612 = vst [vmem:[#allocation7 + $0xe8] sm:$0xff] %v1484_v55  ;;  %v1101_v62 = vmul.f32 %v1801_v58, %v2111_v5  ;;  %v1230_v63 = vmul.f32 %v1801_v58, %v2113_v6  ;;  %v883_v10 = vmul.f32 1.442695, %v720_v56  ;;  %v721_v9 = vmul.f32 %v593_v54, %v335_v47 }
  0x87   :  { %v1357_v12 = vadd.f32 1.0, %v1229_v52  ;;  %v336_v13 = vmul.f32 %v208_v1, %v208_v1  ;;  %v594_v59 = vsel %vm464_vm5, %v2109_v4, %v2119_v8  ;;  %v337_v11 = vmul.f32 %v209_v2, %v209_v2  ;;  %v2749_v1 = vld [vmem:[#allocation6 + $0x158] sm:$0xff] }
  0x88   :  { %v1803_v17 = vpop.eup %1802  ;;  %v1358_v19 = vadd.f32 1.0, %v1230_v63  ;;  %1808 = vpow2.f32 %v883_v10  ;;  %v885_v18 = vmul.f32 1.442695, %v721_v9  ;;  %vm465_vm6 = vcmp.lt.f32.partialorder %v2652_v7, %v2107_v3 }
  0x89   :  { %v1485_v22 = vsel %vm457_vm14, %v1100_v61, %v1357_v12  ;;  %v1102_v57 = vmul.f32 %v1803_v17, %v2111_v5  ;;  %v1231_v23 = vmul.f32 %v1803_v17, %v2113_v6  ;;  %v722_v24 = vmul.f32 %v594_v59, %v336_v13  ;;  %v2767_v13 = vld [vmem:[#allocation6 + $0x160] sm:$0xff] }
  0x8a   :  { %1613 = vst [vmem:[#allocation7 + $0xf0] sm:$0xff] %v1485_v22  ;;  %v1486_v16 = vsel %vm458_vm15, %v1101_v62, %v1358_v19  ;;  %1810 = vpow2.f32 %v885_v18  ;;  %v595_v20 = vsel %vm465_vm6, %v2109_v4, %v2119_v8  ;;  %v210_v26 = vsub.f32 %v2687_v50, %v2107_v3 }
  0x8b   :  { %1614 = vst [vmem:[#allocation7 + $0xf8] sm:$0xff] %v1486_v16  ;;  %v1359_v27 = vadd.f32 1.0, %v1231_v23  ;;  %v887_v30 = vmul.f32 1.442695, %v722_v24  ;;  %v723_v29 = vmul.f32 %v595_v20, %v337_v11  ;;  %vm466_vm7 = vcmp.lt.f32.partialorder %v2687_v50, %v2107_v3  ;;  %v2783_v20 = vld [vmem:[#allocation6 + $0x168] sm:$0xff] }
  0x8c   :  { %v1805_v31 = vpop.eup %1804  ;;  %v338_v21 = vmul.f32 %v210_v26, %v210_v26  ;;  %v596_v32 = vsel %vm466_vm7, %v2109_v4, %v2119_v8  ;;  %v211_v33 = vsub.f32 %v2696_v25, %v2107_v3  ;;  %vm467_vm8 = vcmp.lt.f32.partialorder %v2696_v25, %v2107_v3 }
  0x8d   :  { %v1487_v34 = vsel %vm459_vm0, %v1102_v57, %v1359_v27  ;;  %v1103_v38 = vmul.f32 %v1805_v31, %v2111_v5  ;;  %v1232_v39 = vmul.f32 %v1805_v31, %v2113_v6  ;;  %1812 = vpow2.f32 %v887_v30 }
  0x8e   :  { %1615 = vst [vmem:[#allocation7 + $0x100] sm:$0xff] %v1487_v34  ;;  %v889_v41 = vmul.f32 1.442695, %v723_v29  ;;  %v724_v42 = vmul.f32 %v596_v32, %v338_v21  ;;  %v339_v43 = vmul.f32 %v211_v33, %v211_v33  ;;  %v597_v37 = vsel %vm467_vm8, %v2109_v4, %v2119_v8  ;;  %v2795_v32 = vld [vmem:[#allocation6 + $0x170] sm:$0xff] }
  0x8f   :  { %v1807_v45 = vpop.eup %1806  ;;  %v1360_v46 = vadd.f32 1.0, %v1232_v39  ;;  %v212_v44 = vsub.f32 %v2719_v35, %v2107_v3  ;;  %vm468_vm9 = vcmp.lt.f32.partialorder %v2719_v35, %v2107_v3  ;;  %v213_v40 = vsub.f32 %v2721_v36, %v2107_v3 }
  0x90   :  { %v1104_v47 = vmul.f32 %v1807_v45, %v2111_v5  ;;  %v1233_v0 = vmul.f32 %v1807_v45, %v2113_v6  ;;  %1814 = vpow2.f32 %v889_v41  ;;  %v891_v51 = vmul.f32 1.442695, %v724_v42 }
  0x91   :  { %v1488_v53 = vsel %vm460_vm1, %v1103_v38, %v1360_v46  ;;  %v725_v56 = vmul.f32 %v597_v37, %v339_v43  ;;  %v340_v48 = vmul.f32 %v212_v44, %v212_v44  ;;  %v598_v54 = vsel %vm468_vm9, %v2109_v4, %v2119_v8 }
  0x92   :  { %v1809_v2 = vpop.eup %1808  ;;  %1616 = vst [vmem:[#allocation7 + $0x108] sm:$0xff] %v1488_v53  ;;  %v1361_v58 = vadd.f32 1.0, %v1233_v0  ;;  %1816 = vpow2.f32 %v891_v51  ;;  %v341_v55 = vmul.f32 %v213_v40, %v213_v40  ;;  %vm469_vm10 = vcmp.lt.f32.partialorder %v2721_v36, %v2107_v3  ;;  %v2813_v40 = vld [vmem:[#allocation6 + $0x178] sm:$0xff] }
  0x93   :  { %v1105_v60 = vmul.f32 %v1809_v2, %v2111_v5  ;;  %v1234_v61 = vmul.f32 %v1809_v2, %v2113_v6  ;;  %v893_v52 = vmul.f32 1.442695, %v725_v56  ;;  %v726_v62 = vmul.f32 %v598_v54, %v340_v48 }
  0x94   :  { %v1811_v63 = vpop.eup %1810  ;;  %v1489_v10 = vsel %vm461_vm2, %v1104_v47, %v1361_v58  ;;  %v599_v9 = vsel %vm469_vm10, %v2109_v4, %v2119_v8  ;;  %v214_v12 = vsub.f32 %v2749_v1, %v2107_v3  ;;  %vm470_vm11 = vcmp.lt.f32.partialorder %v2749_v1, %v2107_v3 }
  0x95   :  { %1617 = vst [vmem:[#allocation7 + $0x110] sm:$0xff] %v1489_v10  ;;  %v1362_v59 = vadd.f32 1.0, %v1234_v61  ;;  %v1106_v11 = vmul.f32 %v1811_v63, %v2111_v5  ;;  %v1235_v14 = vmul.f32 %v1811_v63, %v2113_v6  ;;  %1818 = vpow2.f32 %v893_v52 }
  0x96   :  { %v895_v17 = vmul.f32 1.442695, %v726_v62  ;;  %v727_v19 = vmul.f32 %v599_v9, %v341_v55  ;;  %v342_v18 = vmul.f32 %v214_v12, %v214_v12  ;;  %v600_v22 = vsel %vm470_vm11, %v2109_v4, %v2119_v8  ;;  %v2838_v9 = vld [vmem:[#allocation6 + $0x188] sm:$0xff] }
  0x97   :  { %v1813_v57 = vpop.eup %1812  ;;  %v1490_v23 = vsel %vm462_vm3, %v1105_v60, %v1362_v59  ;;  %v1363_v24 = vadd.f32 1.0, %v1235_v14  ;;  %v215_v16 = vsub.f32 %v2767_v13, %v2107_v3  ;;  %vm471_vm12 = vcmp.lt.f32.partialorder %v2767_v13, %v2107_v3  ;;  %v2829_v60 = vld [vmem:[#allocation6 + $0x180] sm:$0xff] }
  0x98   :  { %1618 = vst [vmem:[#allocation7 + $0x118] sm:$0xff] %v1490_v23  ;;  %v1107_v26 = vmul.f32 %v1813_v57, %v2111_v5  ;;  %v1236_v27 = vmul.f32 %v1813_v57, %v2113_v6  ;;  %1820 = vpow2.f32 %v895_v17  ;;  %v897_v30 = vmul.f32 1.442695, %v727_v19 }
  0x99   :  { %v1491_v15 = vsel %vm463_vm4, %v1106_v11, %v1363_v24  ;;  %v728_v29 = vmul.f32 %v600_v22, %v342_v18  ;;  %v343_v31 = vmul.f32 %v215_v16, %v215_v16  ;;  %v601_v21 = vsel %vm471_vm12, %v2109_v4, %v2119_v8 }
  0x9a   :  { %v1815_v33 = vpop.eup %1814  ;;  %1619 = vst [vmem:[#allocation7 + $0x120] sm:$0xff] %v1491_v15  ;;  %v1364_v34 = vadd.f32 1.0, %v1236_v27  ;;  %1822 = vpow2.f32 %v897_v30  ;;  %v216_v38 = vsub.f32 %v2783_v20, %v2107_v3  ;;  %vm472_vm13 = vcmp.lt.f32.partialorder %v2783_v20, %v2107_v3 }
  0x9b   :  { %v1108_v28 = vmul.f32 %v1815_v33, %v2111_v5  ;;  %v1237_v39 = vmul.f32 %v1815_v33, %v2113_v6  ;;  %v899_v41 = vmul.f32 1.442695, %v728_v29  ;;  %v729_v42 = vmul.f32 %v601_v21, %v343_v31  ;;  %v2865_v29 = vld [vmem:[#allocation6 + $0x190] sm:$0xff] }
  0x9c   :  { %v1817_v43 = vpop.eup %1816  ;;  %v1492_v37 = vsel %vm464_vm5, %v1107_v26, %v1364_v34  ;;  %v344_v45 = vmul.f32 %v216_v38, %v216_v38  ;;  %v602_v46 = vsel %vm472_vm13, %v2109_v4, %v2119_v8  ;;  %v217_v44 = vsub.f32 %v2795_v32, %v2107_v3 }
  0x9d   :  { %1620 = vst [vmem:[#allocation7 + $0x128] sm:$0xff] %v1492_v37  ;;  %v1365_v47 = vadd.f32 1.0, %v1237_v39  ;;  %v1109_v0 = vmul.f32 %v1817_v43, %v2111_v5  ;;  %v1238_v51 = vmul.f32 %v1817_v43, %v2113_v6  ;;  %1824 = vpow2.f32 %v899_v41 }
  0x9e   :  { %v901_v49 = vmul.f32 1.442695, %v729_v42  ;;  %v730_v53 = vmul.f32 %v602_v46, %v344_v45  ;;  %v345_v56 = vmul.f32 %v217_v44, %v217_v44  ;;  %vm473_vm14 = vcmp.lt.f32.partialorder %v2795_v32, %v2107_v3 }
  0x9f   :  { %v1819_v48 = vpop.eup %1818  ;;  %v1493_v54 = vsel %vm465_vm6, %v1108_v28, %v1365_v47  ;;  %v1366_v2 = vadd.f32 1.0, %v1238_v51  ;;  %v603_v58 = vsel %vm473_vm14, %v2109_v4, %v2119_v8  ;;  %v218_v55 = vsub.f32 %v2813_v40, %v2107_v3  ;;  %v2875_v28 = vld [vmem:[#allocation6 + $0x198] sm:$0xff] }
  0xa0   :  { %1621 = vst [vmem:[#allocation7 + $0x130] sm:$0xff] %v1493_v54  ;;  %v1110_v61 = vmul.f32 %v1819_v48, %v2111_v5  ;;  %v1239_v52 = vmul.f32 %v1819_v48, %v2113_v6  ;;  %1826 = vpow2.f32 %v901_v49  ;;  %v903_v7 = vmul.f32 1.442695, %v730_v53  ;;  %v2895_v53 = vld [vmem:[#allocation6 + $0x1a0] sm:$0xff] }
  0xa1   :  { %v1494_v62 = vsel %vm466_vm7, %v1109_v0, %v1366_v2  ;;  %v731_v63 = vmul.f32 %v603_v58, %v345_v56  ;;  %v346_v10 = vmul.f32 %v218_v55, %v218_v55  ;;  %vm474_vm15 = vcmp.lt.f32.partialorder %v2813_v40, %v2107_v3  ;;  %v2897_v56 = vld [vmem:[#allocation6 + $0x1a8] sm:$0xff] }
  0xa2   :  { %v1821_v12 = vpop.eup %1820  ;;  %1622 = vst [vmem:[#allocation7 + $0x138] sm:$0xff] %v1494_v62  ;;  %v1367_v59 = vadd.f32 1.0, %v1239_v52  ;;  %1828 = vpow2.f32 %v903_v7  ;;  %v604_v11 = vsel %vm474_vm15, %v2109_v4, %v2119_v8  ;;  %v219_v50 = vsub.f32 %v2829_v60, %v2107_v3 }
  0xa3   :  { %v1111_v14 = vmul.f32 %v1821_v12, %v2111_v5  ;;  %v1240_v17 = vmul.f32 %v1821_v12, %v2113_v6  ;;  %v905_v19 = vmul.f32 1.442695, %v731_v63  ;;  %v732_v18 = vmul.f32 %v604_v11, %v346_v10 }
  0xa4   :  { %v1823_v22 = vpop.eup %1822  ;;  %v1495_v57 = vsel %vm467_vm8, %v1110_v61, %v1367_v59  ;;  %v347_v23 = vmul.f32 %v219_v50, %v219_v50  ;;  %vm475_vm0 = vcmp.lt.f32.partialorder %v2829_v60, %v2107_v3  ;;  %v220_v24 = vsub.f32 %v2838_v9, %v2107_v3  ;;  %v2920_v50 = vld [vmem:[#allocation6 + $0x1b0] sm:$0xff] }
  0xa5   :  { %1623 = vst [vmem:[#allocation7 + $0x140] sm:$0xff] %v1495_v57  ;;  %v1368_v16 = vadd.f32 1.0, %v1240_v17  ;;  %v1112_v26 = vmul.f32 %v1823_v22, %v2111_v5  ;;  %v1241_v27 = vmul.f32 %v1823_v22, %v2113_v6  ;;  %1830 = vpow2.f32 %v905_v19 }
  0xa6   :  { %v907_v30 = vmul.f32 1.442695, %v732_v18  ;;  %v605_v25 = vsel %vm475_vm0, %v2109_v4, %v2119_v8  ;;  %v348_v15 = vmul.f32 %v220_v24, %v220_v24  ;;  %vm476_vm1 = vcmp.lt.f32.partialorder %v2838_v9, %v2107_v3 }
  0xa7   :  { %v1825_v31 = vpop.eup %1824  ;;  %v1496_v21 = vsel %vm468_vm9, %v1111_v14, %v1368_v16  ;;  %v1369_v33 = vadd.f32 1.0, %v1241_v27  ;;  %v733_v34 = vmul.f32 %v605_v25, %v347_v23  ;;  %v606_v38 = vsel %vm476_vm1, %v2109_v4, %v2119_v8  ;;  %v2936_v27 = vld [vmem:[#allocation6 + $0x1b8] sm:$0xff] }
  0xa8   :  { %1624 = vst [vmem:[#allocation7 + $0x148] sm:$0xff] %v1496_v21  ;;  %v1113_v39 = vmul.f32 %v1825_v31, %v2111_v5  ;;  %v1242_v41 = vmul.f32 %v1825_v31, %v2113_v6  ;;  %1832 = vpow2.f32 %v907_v30  ;;  %v734_v42 = vmul.f32 %v606_v38, %v348_v15 }
  0xa9   :  { %v1497_v35 = vsel %vm469_vm10, %v1112_v26, %v1369_v33  ;;  %v909_v43 = vmul.f32 1.442695, %v733_v34  ;;  %v221_v37 = vsub.f32 %v2865_v29, %v2107_v3  ;;  %vm477_vm2 = vcmp.lt.f32.partialorder %v2865_v29, %v2107_v3 }
  0xaa   :  { %v1827_v45 = vpop.eup %1826  ;;  %1625 = vst [vmem:[#allocation7 + $0x150] sm:$0xff] %v1497_v35  ;;  %v1370_v46 = vadd.f32 1.0, %v1242_v41  ;;  %v911_v44 = vmul.f32 1.442695, %v734_v42  ;;  %v607_v47 = vsel %vm477_vm2, %v2109_v4, %v2119_v8  ;;  %v222_v36 = vsub.f32 %v2875_v28, %v2107_v3 }
  0xab   :  { %v1114_v0 = vmul.f32 %v1827_v45, %v2111_v5  ;;  %v1243_v51 = vmul.f32 %v1827_v45, %v2113_v6  ;;  %1834 = vpow2.f32 %v909_v43  ;;  %v349_v49 = vmul.f32 %v221_v37, %v221_v37  ;;  %v2956_v43 = vld [vmem:[#allocation6 + $0x1c0] sm:$0xff] }
  0xac   :  { %v1829_v48 = vpop.eup %1828  ;;  %v1498_v54 = vsel %vm470_vm11, %v1113_v39, %v1370_v46  ;;  %1836 = vpow2.f32 %v911_v44  ;;  %v350_v2 = vmul.f32 %v222_v36, %v222_v36  ;;  %vm478_vm3 = vcmp.lt.f32.partialorder %v2875_v28, %v2107_v3 }
  0xad   :  { %1626 = vst [vmem:[#allocation7 + $0x158] sm:$0xff] %v1498_v54  ;;  %v1371_v58 = vadd.f32 1.0, %v1243_v51  ;;  %v1115_v55 = vmul.f32 %v1829_v48, %v2111_v5  ;;  %v1244_v61 = vmul.f32 %v1829_v48, %v2113_v6  ;;  %v735_v52 = vmul.f32 %v607_v47, %v349_v49  ;;  %v2968_v51 = vld [vmem:[#allocation6 + $0x1c8] sm:$0xff] }
  0xae   :  { %v608_v7 = vsel %vm478_vm3, %v2109_v4, %v2119_v8  ;;  %v223_v1 = vsub.f32 %v2895_v53, %v2107_v3  ;;  %vm479_vm4 = vcmp.lt.f32.partialorder %v2895_v53, %v2107_v3  ;;  %v224_v62 = vsub.f32 %v2897_v56, %v2107_v3 }
  0xaf   :  { %v1831_v63 = vpop.eup %1830  ;;  %v1499_v10 = vsel %vm471_vm12, %v1114_v0, %v1371_v58  ;;  %v1372_v12 = vadd.f32 1.0, %v1244_v61  ;;  %v913_v59 = vmul.f32 1.442695, %v735_v52  ;;  %v736_v11 = vmul.f32 %v608_v7, %v350_v2  ;;  %v2987_v61 = vld [vmem:[#allocation6 + $0x1d0] sm:$0xff] }
  0xb0   :  { %1627 = vst [vmem:[#allocation7 + $0x160] sm:$0xff] %v1499_v10  ;;  %v1116_v14 = vmul.f32 %v1831_v63, %v2111_v5  ;;  %v1245_v17 = vmul.f32 %v1831_v63, %v2113_v6  ;;  %v351_v19 = vmul.f32 %v223_v1, %v223_v1  ;;  %v609_v18 = vsel %vm479_vm4, %v2109_v4, %v2119_v8 }
  0xb1   :  { %v1500_v13 = vsel %vm472_vm13, %v1115_v55, %v1372_v12  ;;  %1838 = vpow2.f32 %v913_v59  ;;  %v915_v22 = vmul.f32 1.442695, %v736_v11  ;;  %v352_v57 = vmul.f32 %v224_v62, %v224_v62 }
  0xb2   :  { %v1833_v23 = vpop.eup %1832  ;;  %1628 = vst [vmem:[#allocation7 + $0x168] sm:$0xff] %v1500_v13  ;;  %v1373_v24 = vadd.f32 1.0, %v1245_v17  ;;  %v737_v16 = vmul.f32 %v609_v18, %v351_v19  ;;  %vm480_vm5 = vcmp.lt.f32.partialorder %v2897_v56, %v2107_v3  ;;  %v225_v26 = vsub.f32 %v2920_v50, %v2107_v3  ;;  %v3005_v17 = vld [vmem:[#allocation6 + $0x1d8] sm:$0xff] }
  0xb3   :  { %v1117_v30 = vmul.f32 %v1833_v23, %v2111_v5  ;;  %v1246_v20 = vmul.f32 %v1833_v23, %v2113_v6  ;;  %1840 = vpow2.f32 %v915_v22  ;;  %v610_v25 = vsel %vm480_vm5, %v2109_v4, %v2119_v8  ;;  %v3069_v56 = vld [vmem:[#allocation6 + $0x1f8] sm:$0xff] }
  0xb4   :  { %v1501_v15 = vsel %vm473_vm14, %v1116_v14, %v1373_v24  ;;  %v917_v31 = vmul.f32 1.442695, %v737_v16  ;;  %v738_v21 = vmul.f32 %v610_v25, %v352_v57  ;;  %v353_v33 = vmul.f32 %v225_v26, %v225_v26 }
  0xb5   :  { %v1835_v34 = vpop.eup %1834  ;;  %1629 = vst [vmem:[#allocation7 + $0x170] sm:$0xff] %v1501_v15  ;;  %v1374_v38 = vadd.f32 1.0, %v1246_v20  ;;  %vm481_vm6 = vcmp.lt.f32.partialorder %v2920_v50, %v2107_v3  ;;  %v226_v39 = vsub.f32 %v2936_v27, %v2107_v3  ;;  %vm482_vm7 = vcmp.lt.f32.partialorder %v2936_v27, %v2107_v3 }
  0xb6   :  { %v1837_v41 = vpop.eup %1836  ;;  %v1118_v42 = vmul.f32 %v1835_v34, %v2111_v5  ;;  %v1247_v32 = vmul.f32 %v1835_v34, %v2113_v6  ;;  %1842 = vpow2.f32 %v917_v31  ;;  %v919_v35 = vmul.f32 1.442695, %v738_v21  ;;  %v3023_v21 = vld [vmem:[#allocation6 + $0x1e0] sm:$0xff] }
  0xb7   :  { %v1502_v37 = vsel %vm474_vm15, %v1117_v30, %v1374_v38  ;;  %v1119_v45 = vmul.f32 %v1837_v41, %v2111_v5  ;;  %v1248_v46 = vmul.f32 %v1837_v41, %v2113_v6  ;;  %v611_v44 = vsel %vm481_vm6, %v2109_v4, %v2119_v8 }
  0xb8   :  { %1630 = vst [vmem:[#allocation7 + $0x178] sm:$0xff] %v1502_v37  ;;  %v1375_v47 = vadd.f32 1.0, %v1247_v32  ;;  %1844 = vpow2.f32 %v919_v35  ;;  %v739_v36 = vmul.f32 %v611_v44, %v353_v33  ;;  %v354_v0 = vmul.f32 %v226_v39, %v226_v39  ;;  %v3032_v32 = vld [vmem:[#allocation6 + $0x1e8] sm:$0xff] }
  0xb9   :  { %v1376_v49 = vadd.f32 1.0, %v1248_v46  ;;  %v612_v40 = vsel %vm482_vm7, %v2109_v4, %v2119_v8  ;;  %v227_v48 = vsub.f32 %v2956_v43, %v2107_v3  ;;  %vm483_vm8 = vcmp.lt.f32.partialorder %v2956_v43, %v2107_v3 }
  0xba   :  { %v1503_v54 = vsel %vm475_vm0, %v1118_v42, %v1375_v47  ;;  %v921_v2 = vmul.f32 1.442695, %v739_v36  ;;  %v740_v58 = vmul.f32 %v612_v40, %v354_v0  ;;  %v613_v55 = vsel %vm483_vm8, %v2109_v4, %v2119_v8  ;;  %v3051_v36 = vld [vmem:[#allocation6 + $0x1f0] sm:$0xff] }
  0xbb   :  { %v1839_v52 = vpop.eup %1838  ;;  %1631 = vst [vmem:[#allocation7 + $0x180] sm:$0xff] %v1503_v54  ;;  %v1504_v7 = vsel %vm476_vm1, %v1119_v45, %v1376_v49  ;;  %v355_v1 = vmul.f32 %v227_v48, %v227_v48  ;;  %v228_v60 = vsub.f32 %v2968_v51, %v2107_v3  ;;  %vm484_vm9 = vcmp.lt.f32.partialorder %v2968_v51, %v2107_v3 }
  0xbc   :  { %1632 = vst [vmem:[#allocation7 + $0x188] sm:$0xff] %v1504_v7  ;;  %v1120_v62 = vmul.f32 %v1839_v52, %v2111_v5  ;;  %v1249_v63 = vmul.f32 %v1839_v52, %v2113_v6  ;;  %1846 = vpow2.f32 %v921_v2  ;;  %v923_v10 = vmul.f32 1.442695, %v740_v58 }
  0xbd   :  { %v1841_v12 = vpop.eup %1840  ;;  %v741_v59 = vmul.f32 %v613_v55, %v355_v1  ;;  %v356_v11 = vmul.f32 %v228_v60, %v228_v60  ;;  %v614_v9 = vsel %vm484_vm9, %v2109_v4, %v2119_v8  ;;  %v229_v14 = vsub.f32 %v2987_v61, %v2107_v3 }
  0xbe   :  { %v1377_v19 = vadd.f32 1.0, %v1249_v63  ;;  %v1121_v18 = vmul.f32 %v1841_v12, %v2111_v5  ;;  %v1250_v13 = vmul.f32 %v1841_v12, %v2113_v6  ;;  %1848 = vpow2.f32 %v923_v10 }
  0xbf   :  { %v925_v22 = vmul.f32 1.442695, %v741_v59  ;;  %v742_v57 = vmul.f32 %v614_v9, %v356_v11  ;;  %v357_v23 = vmul.f32 %v229_v14, %v229_v14  ;;  %vm485_vm10 = vcmp.lt.f32.partialorder %v2987_v61, %v2107_v3 }
  0xc0   :  { %v1843_v24 = vpop.eup %1842  ;;  %v1505_v16 = vsel %vm477_vm2, %v1120_v62, %v1377_v19  ;;  %v1378_v26 = vadd.f32 1.0, %v1250_v13  ;;  %v615_v30 = vsel %vm485_vm10, %v2109_v4, %v2119_v8  ;;  %v230_v20 = vsub.f32 %v3005_v17, %v2107_v3 }
  0xc1   :  { %1633 = vst [vmem:[#allocation7 + $0x190] sm:$0xff] %v1505_v16  ;;  %v1122_v25 = vmul.f32 %v1843_v24, %v2111_v5  ;;  %v1251_v15 = vmul.f32 %v1843_v24, %v2113_v6  ;;  %1850 = vpow2.f32 %v925_v22  ;;  %v927_v31 = vmul.f32 1.442695, %v742_v57 }
  0xc2   :  { %v1845_v29 = vpop.eup %1844  ;;  %v1506_v33 = vsel %vm478_vm3, %v1121_v18, %v1378_v26  ;;  %v743_v34 = vmul.f32 %v615_v30, %v357_v23  ;;  %v358_v38 = vmul.f32 %v230_v20, %v230_v20  ;;  %vm486_vm11 = vcmp.lt.f32.partialorder %v3005_v17, %v2107_v3  ;;  %v3087_v23 = vld [vmem:[#allocation6 + $0x200] sm:$0xff] }
  0xc3   :  { %1634 = vst [vmem:[#allocation7 + $0x198] sm:$0xff] %v1506_v33  ;;  %v1379_v39 = vadd.f32 1.0, %v1251_v15  ;;  %v1123_v41 = vmul.f32 %v1845_v29, %v2111_v5  ;;  %v1252_v42 = vmul.f32 %v1845_v29, %v2113_v6  ;;  %1852 = vpow2.f32 %v927_v31  ;;  %v3105_v29 = vld [vmem:[#allocation6 + $0x208] sm:$0xff] }
  0xc4   :  { %v929_v35 = vmul.f32 1.442695, %v743_v34  ;;  %v616_v28 = vsel %vm486_vm11, %v2109_v4, %v2119_v8  ;;  %v231_v37 = vsub.f32 %v3023_v21, %v2107_v3  ;;  %vm487_vm12 = vcmp.lt.f32.partialorder %v3023_v21, %v2107_v3 }
  0xc5   :  { %v1507_v45 = vsel %vm479_vm4, %v1122_v25, %v1379_v39  ;;  %v1380_v46 = vadd.f32 1.0, %v1252_v42  ;;  %v744_v44 = vmul.f32 %v616_v28, %v358_v38  ;;  %v617_v47 = vsel %vm487_vm12, %v2109_v4, %v2119_v8  ;;  %v3115_v42 = vld [vmem:[#allocation6 + $0x210] sm:$0xff] }
  0xc6   :  { %v1847_v0 = vpop.eup %1846  ;;  %1635 = vst [vmem:[#allocation7 + $0x1a0] sm:$0xff] %v1507_v45  ;;  %1854 = vpow2.f32 %v929_v35  ;;  %v359_v49 = vmul.f32 %v231_v37, %v231_v37  ;;  %v232_v40 = vsub.f32 %v3032_v32, %v2107_v3  ;;  %vm488_vm13 = vcmp.lt.f32.partialorder %v3032_v32, %v2107_v3 }
  0xc7   :  { %v1508_v53 = vsel %vm480_vm5, %v1123_v41, %v1380_v46  ;;  %v1124_v48 = vmul.f32 %v1847_v0, %v2111_v5  ;;  %v1253_v54 = vmul.f32 %v1847_v0, %v2113_v6  ;;  %v931_v2 = vmul.f32 1.442695, %v744_v44 }
  0xc8   :  { %v1849_v58 = vpop.eup %1848  ;;  %1636 = vst [vmem:[#allocation7 + $0x1a8] sm:$0xff] %v1508_v53  ;;  %v745_v55 = vmul.f32 %v617_v47, %v359_v49  ;;  %v360_v52 = vmul.f32 %v232_v40, %v232_v40  ;;  %v618_v7 = vsel %vm488_vm13, %v2109_v4, %v2119_v8  ;;  %v233_v1 = vsub.f32 %v3051_v36, %v2107_v3  ;;  %v3133_v40 = vld [vmem:[#allocation6 + $0x218] sm:$0xff] }
  0xc9   :  { %v1381_v60 = vadd.f32 1.0, %v1253_v54  ;;  %v1125_v62 = vmul.f32 %v1849_v58, %v2111_v5  ;;  %v1254_v63 = vmul.f32 %v1849_v58, %v2113_v6  ;;  %1856 = vpow2.f32 %v931_v2 }
  0xca   :  { %v933_v10 = vmul.f32 1.442695, %v745_v55  ;;  %v746_v12 = vmul.f32 %v618_v7, %v360_v52  ;;  %v361_v59 = vmul.f32 %v233_v1, %v233_v1  ;;  %vm489_vm14 = vcmp.lt.f32.partialorder %v3051_v36, %v2107_v3  ;;  %v3213_v36 = vld [vmem:[#allocation6 + $0x240] sm:$0xff] }
  0xcb   :  { %v1851_v11 = vpop.eup %1850  ;;  %v1509_v9 = vsel %vm481_vm6, %v1124_v48, %v1381_v60  ;;  %v1382_v14 = vadd.f32 1.0, %v1254_v63  ;;  %v619_v19 = vsel %vm489_vm14, %v2109_v4, %v2119_v8  ;;  %v234_v18 = vsub.f32 %v3069_v56, %v2107_v3 }
  0xcc   :  { %1637 = vst [vmem:[#allocation7 + $0x1b0] sm:$0xff] %v1509_v9  ;;  %v1126_v13 = vmul.f32 %v1851_v11, %v2111_v5  ;;  %v1255_v22 = vmul.f32 %v1851_v11, %v2113_v6  ;;  %1858 = vpow2.f32 %v933_v10  ;;  %v935_v57 = vmul.f32 1.442695, %v746_v12  ;;  %v3151_v12 = vld [vmem:[#allocation6 + $0x220] sm:$0xff] }
  0xcd   :  { %v1853_v50 = vpop.eup %1852  ;;  %v1510_v24 = vsel %vm482_vm7, %v1125_v62, %v1382_v14  ;;  %v747_v16 = vmul.f32 %v619_v19, %v361_v59  ;;  %v362_v26 = vmul.f32 %v234_v18, %v234_v18  ;;  %vm490_vm15 = vcmp.lt.f32.partialorder %v3069_v56, %v2107_v3 }
  0xce   :  { %1638 = vst [vmem:[#allocation7 + $0x1b8] sm:$0xff] %v1510_v24  ;;  %v1383_v30 = vadd.f32 1.0, %v1255_v22  ;;  %v1127_v20 = vmul.f32 %v1853_v50, %v2111_v5  ;;  %v1256_v25 = vmul.f32 %v1853_v50, %v2113_v6  ;;  %1860 = vpow2.f32 %v935_v57  ;;  %v3169_v50 = vld [vmem:[#allocation6 + $0x228] sm:$0xff] }
  0xcf   :  { %v937_v15 = vmul.f32 1.442695, %v747_v16  ;;  %v620_v27 = vsel %vm490_vm15, %v2109_v4, %v2119_v8  ;;  %v235_v31 = vsub.f32 %v3087_v23, %v2107_v3  ;;  %vm491_vm0 = vcmp.lt.f32.partialorder %v3087_v23, %v2107_v3 }
  0xd0   :  { %v1855_v33 = vpop.eup %1854  ;;  %v1511_v34 = vsel %vm483_vm8, %v1126_v13, %v1383_v30  ;;  %v1384_v38 = vadd.f32 1.0, %v1256_v25  ;;  %v748_v39 = vmul.f32 %v620_v27, %v362_v26  ;;  %v621_v41 = vsel %vm491_vm0, %v2109_v4, %v2119_v8 }
  0xd1   :  { %1639 = vst [vmem:[#allocation7 + $0x1c0] sm:$0xff] %v1511_v34  ;;  %v1128_v35 = vmul.f32 %v1855_v33, %v2111_v5  ;;  %v1257_v28 = vmul.f32 %v1855_v33, %v2113_v6  ;;  %1862 = vpow2.f32 %v937_v15  ;;  %v363_v37 = vmul.f32 %v235_v31, %v235_v31 }
  0xd2   :  { %v1512_v43 = vsel %vm484_vm9, %v1127_v20, %v1384_v38  ;;  %v939_v45 = vmul.f32 1.442695, %v748_v39  ;;  %v236_v46 = vsub.f32 %v3105_v29, %v2107_v3  ;;  %vm492_vm1 = vcmp.lt.f32.partialorder %v3105_v29, %v2107_v3  ;;  %v3174_v20 = vld [vmem:[#allocation6 + $0x230] sm:$0xff] }
  0xd3   :  { %v1857_v44 = vpop.eup %1856  ;;  %1640 = vst [vmem:[#allocation7 + $0x1c8] sm:$0xff] %v1512_v43  ;;  %v1385_v47 = vadd.f32 1.0, %v1257_v28  ;;  %v749_v0 = vmul.f32 %v621_v41, %v363_v37  ;;  %v622_v49 = vsel %vm492_vm1, %v2109_v4, %v2119_v8  ;;  %v237_v51 = vsub.f32 %v3115_v42, %v2107_v3  ;;  %v3197_v28 = vld [vmem:[#allocation6 + $0x238] sm:$0xff] }
  0xd4   :  { %v1129_v53 = vmul.f32 %v1857_v44, %v2111_v5  ;;  %v1258_v48 = vmul.f32 %v1857_v44, %v2113_v6  ;;  %1864 = vpow2.f32 %v939_v45  ;;  %v364_v54 = vmul.f32 %v236_v46, %v236_v46 }
  0xd5   :  { %v1513_v2 = vsel %vm485_vm10, %v1128_v35, %v1385_v47  ;;  %v941_v58 = vmul.f32 1.442695, %v749_v0  ;;  %v365_v55 = vmul.f32 %v237_v51, %v237_v51  ;;  %vm493_vm2 = vcmp.lt.f32.partialorder %v3115_v42, %v2107_v3 }
  0xd6   :  { %v1859_v52 = vpop.eup %1858  ;;  %1641 = vst [vmem:[#allocation7 + $0x1d0] sm:$0xff] %v1513_v2  ;;  %v1386_v7 = vadd.f32 1.0, %v1258_v48  ;;  %v750_v1 = vmul.f32 %v622_v49, %v364_v54  ;;  %v623_v60 = vsel %vm493_vm2, %v2109_v4, %v2119_v8  ;;  %v238_v62 = vsub.f32 %v3133_v40, %v2107_v3 }
  0xd7   :  { %v1130_v61 = vmul.f32 %v1859_v52, %v2111_v5  ;;  %v1259_v63 = vmul.f32 %v1859_v52, %v2113_v6  ;;  %1866 = vpow2.f32 %v941_v58  ;;  %v751_v10 = vmul.f32 %v623_v60, %v365_v55 }
  0xd8   :  { %v1861_v59 = vpop.eup %1860  ;;  %v1514_v11 = vsel %vm486_vm11, %v1129_v53, %v1386_v7  ;;  %v943_v9 = vmul.f32 1.442695, %v750_v1  ;;  %v366_v14 = vmul.f32 %v238_v62, %v238_v62  ;;  %vm494_vm3 = vcmp.lt.f32.partialorder %v3133_v40, %v2107_v3 }
  0xd9   :  { %1642 = vst [vmem:[#allocation7 + $0x1d8] sm:$0xff] %v1514_v11  ;;  %v1387_v19 = vadd.f32 1.0, %v1259_v63  ;;  %v1131_v18 = vmul.f32 %v1861_v59, %v2111_v5  ;;  %v1260_v13 = vmul.f32 %v1861_v59, %v2113_v6  ;;  %v945_v22 = vmul.f32 1.442695, %v751_v10 }
  0xda   :  { %1868 = vpow2.f32 %v943_v9  ;;  %v624_v17 = vsel %vm494_vm3, %v2109_v4, %v2119_v8  ;;  %v239_v57 = vsub.f32 %v3151_v12, %v2107_v3  ;;  %vm495_vm4 = vcmp.lt.f32.partialorder %v3151_v12, %v2107_v3  ;;  %v3231_v9 = vld [vmem:[#allocation6 + $0x248] sm:$0xff] }
  0xdb   :  { %v1863_v24 = vpop.eup %1862  ;;  %v1515_v16 = vsel %vm487_vm12, %v1130_v61, %v1387_v19  ;;  %v1388_v26 = vadd.f32 1.0, %v1260_v13  ;;  %1870 = vpow2.f32 %v945_v22  ;;  %v752_v30 = vmul.f32 %v624_v17, %v366_v14 }
  0xdc   :  { %1643 = vst [vmem:[#allocation7 + $0x1e0] sm:$0xff] %v1515_v16  ;;  %v1132_v25 = vmul.f32 %v1863_v24, %v2111_v5  ;;  %v1261_v15 = vmul.f32 %v1863_v24, %v2113_v6  ;;  %v367_v27 = vmul.f32 %v239_v57, %v239_v57  ;;  %v625_v31 = vsel %vm495_vm4, %v2109_v4, %v2119_v8  ;;  %v3249_v16 = vld [vmem:[#allocation6 + $0x250] sm:$0xff] }
  0xdd   :  { %v1516_v21 = vsel %vm488_vm13, %v1131_v18, %v1388_v26  ;;  %v947_v33 = vmul.f32 1.442695, %v752_v30  ;;  %v240_v34 = vsub.f32 %v3169_v50, %v2107_v3  ;;  %vm496_vm5 = vcmp.lt.f32.partialorder %v3169_v50, %v2107_v3  ;;  %v3251_v26 = vld [vmem:[#allocation6 + $0x258] sm:$0xff] }
  0xde   :  { %v1865_v38 = vpop.eup %1864  ;;  %1644 = vst [vmem:[#allocation7 + $0x1e8] sm:$0xff] %v1516_v21  ;;  %v1389_v39 = vadd.f32 1.0, %v1261_v15  ;;  %v753_v41 = vmul.f32 %v625_v31, %v367_v27  ;;  %v626_v35 = vsel %vm496_vm5, %v2109_v4, %v2119_v8  ;;  %v241_v32 = vsub.f32 %v3174_v20, %v2107_v3 }
  0xdf   :  { %v1133_v37 = vmul.f32 %v1865_v38, %v2111_v5  ;;  %v1262_v43 = vmul.f32 %v1865_v38, %v2113_v6  ;;  %1872 = vpow2.f32 %v947_v33  ;;  %v368_v45 = vmul.f32 %v240_v34, %v240_v34 }
  0xe0   :  { %v1517_v46 = vsel %vm489_vm14, %v1132_v25, %v1389_v39  ;;  %v949_v44 = vmul.f32 1.442695, %v753_v41  ;;  %v369_v47 = vmul.f32 %v241_v32, %v241_v32  ;;  %vm497_vm6 = vcmp.lt.f32.partialorder %v3174_v20, %v2107_v3 }
  0xe1   :  { %v1867_v0 = vpop.eup %1866  ;;  %1645 = vst [vmem:[#allocation7 + $0x1f0] sm:$0xff] %v1517_v46  ;;  %v1390_v49 = vadd.f32 1.0, %v1262_v43  ;;  %v754_v51 = vmul.f32 %v626_v35, %v368_v45  ;;  %v627_v53 = vsel %vm497_vm6, %v2109_v4, %v2119_v8  ;;  %v242_v48 = vsub.f32 %v3197_v28, %v2107_v3 }
  0xe2   :  { %v1134_v54 = vmul.f32 %v1867_v0, %v2111_v5  ;;  %v1263_v2 = vmul.f32 %v1867_v0, %v2113_v6  ;;  %1874 = vpow2.f32 %v949_v44  ;;  %v755_v58 = vmul.f32 %v627_v53, %v369_v47 }
  0xe3   :  { %v1518_v55 = vsel %vm490_vm15, %v1133_v37, %v1390_v49  ;;  %v951_v52 = vmul.f32 1.442695, %v754_v51  ;;  %v370_v7 = vmul.f32 %v242_v48, %v242_v48  ;;  %vm498_vm7 = vcmp.lt.f32.partialorder %v3197_v28, %v2107_v3  ;;  %v3279_v37 = vld [vmem:[#allocation6 + $0x260] sm:$0xff] }
  0xe4   :  { %v1869_v1 = vpop.eup %1868  ;;  %1646 = vst [vmem:[#allocation7 + $0x1f8] sm:$0xff] %v1518_v55  ;;  %v1391_v60 = vadd.f32 1.0, %v1263_v2  ;;  %v953_v62 = vmul.f32 1.442695, %v755_v58  ;;  %v628_v61 = vsel %vm498_vm7, %v2109_v4, %v2119_v8  ;;  %v243_v63 = vsub.f32 %v3213_v36, %v2107_v3 }
  0xe5   :  { %v1871_v56 = vpop.eup %1870  ;;  %v1135_v10 = vmul.f32 %v1869_v1, %v2111_v5  ;;  %v1264_v59 = vmul.f32 %v1869_v1, %v2113_v6  ;;  %1876 = vpow2.f32 %v951_v52  ;;  %v756_v11 = vmul.f32 %v628_v61, %v370_v7  ;;  %v3297_v52 = vld [vmem:[#allocation6 + $0x268] sm:$0xff] }
  0xe6   :  { %v1519_v14 = vsel %vm491_vm0, %v1134_v54, %v1391_v60  ;;  %v1136_v19 = vmul.f32 %v1871_v56, %v2111_v5  ;;  %v1265_v18 = vmul.f32 %v1871_v56, %v2113_v6  ;;  %1878 = vpow2.f32 %v953_v62 }
  0xe7   :  { %1647 = vst [vmem:[#allocation7 + $0x200] sm:$0xff] %v1519_v14  ;;  %v1392_v13 = vadd.f32 1.0, %v1264_v59  ;;  %v955_v22 = vmul.f32 1.442695, %v756_v11  ;;  %v371_v17 = vmul.f32 %v243_v63, %v243_v63  ;;  %vm499_vm8 = vcmp.lt.f32.partialorder %v3213_v36, %v2107_v3  ;;  %v3313_v14 = vld [vmem:[#allocation6 + $0x270] sm:$0xff] }
  0xe8   :  { %v1393_v57 = vadd.f32 1.0, %v1265_v18  ;;  %v629_v23 = vsel %vm499_vm8, %v2109_v4, %v2119_v8  ;;  %v244_v24 = vsub.f32 %v3231_v9, %v2107_v3  ;;  %vm500_vm9 = vcmp.lt.f32.partialorder %v3231_v9, %v2107_v3 }
  0xe9   :  { %v1873_v30 = vpop.eup %1872  ;;  %v1520_v25 = vsel %vm492_vm1, %v1135_v10, %v1392_v13  ;;  %1880 = vpow2.f32 %v955_v22  ;;  %v757_v15 = vmul.f32 %v629_v23, %v371_v17  ;;  %v630_v27 = vsel %vm500_vm9, %v2109_v4, %v2119_v8 }
  0xea   :  { %1648 = vst [vmem:[#allocation7 + $0x208] sm:$0xff] %v1520_v25  ;;  %v1521_v31 = vsel %vm493_vm2, %v1136_v19, %v1393_v57  ;;  %v1137_v21 = vmul.f32 %v1873_v30, %v2111_v5  ;;  %v1266_v33 = vmul.f32 %v1873_v30, %v2113_v6  ;;  %v372_v34 = vmul.f32 %v244_v24, %v244_v24  ;;  %v3315_v19 = vld [vmem:[#allocation6 + $0x278] sm:$0xff] }
  0xeb   :  { %1649 = vst [vmem:[#allocation7 + $0x210] sm:$0xff] %v1521_v31  ;;  %v957_v29 = vmul.f32 1.442695, %v757_v15  ;;  %v245_v38 = vsub.f32 %v3249_v16, %v2107_v3  ;;  %vm501_vm10 = vcmp.lt.f32.partialorder %v3249_v16, %v2107_v3  ;;  %v246_v39 = vsub.f32 %v3251_v26, %v2107_v3 }
  0xec   :  { %v1875_v41 = vpop.eup %1874  ;;  %v1394_v35 = vadd.f32 1.0, %v1266_v33  ;;  %v758_v42 = vmul.f32 %v630_v27, %v372_v34  ;;  %v631_v32 = vsel %vm501_vm10, %v2109_v4, %v2119_v8  ;;  %vm502_vm11 = vcmp.lt.f32.partialorder %v3251_v26, %v2107_v3 }
  0xed   :  { %v1138_v43 = vmul.f32 %v1875_v41, %v2111_v5  ;;  %v1267_v45 = vmul.f32 %v1875_v41, %v2113_v6  ;;  %1882 = vpow2.f32 %v957_v29  ;;  %v373_v46 = vmul.f32 %v245_v38, %v245_v38 }
  0xee   :  { %v1522_v44 = vsel %vm494_vm3, %v1137_v21, %v1394_v35  ;;  %v959_v47 = vmul.f32 1.442695, %v758_v42  ;;  %v374_v0 = vmul.f32 %v246_v39, %v246_v39  ;;  %v632_v49 = vsel %vm502_vm11, %v2109_v4, %v2119_v8  ;;  %v3343_v21 = vld [vmem:[#allocation6 + $0x280] sm:$0xff] }
  0xef   :  { %v1877_v51 = vpop.eup %1876  ;;  %1650 = vst [vmem:[#allocation7 + $0x218] sm:$0xff] %v1522_v44  ;;  %v1395_v53 = vadd.f32 1.0, %v1267_v45  ;;  %v759_v48 = vmul.f32 %v631_v32, %v373_v46  ;;  %v247_v54 = vsub.f32 %v3279_v37, %v2107_v3  ;;  %vm503_vm12 = vcmp.lt.f32.partialorder %v3279_v37, %v2107_v3  ;;  %v3359_v45 = vld [vmem:[#allocation6 + $0x288] sm:$0xff] }
  0xf0   :  { %v1879_v40 = vpop.eup %1878  ;;  %v1139_v2 = vmul.f32 %v1877_v51, %v2111_v5  ;;  %v1268_v58 = vmul.f32 %v1877_v51, %v2113_v6  ;;  %1884 = vpow2.f32 %v959_v47  ;;  %v760_v55 = vmul.f32 %v632_v49, %v374_v0 }
  0xf1   :  { %v1523_v7 = vsel %vm495_vm4, %v1138_v43, %v1395_v53  ;;  %v1140_v1 = vmul.f32 %v1879_v40, %v2111_v5  ;;  %v1269_v60 = vmul.f32 %v1879_v40, %v2113_v6  ;;  %v961_v62 = vmul.f32 1.442695, %v759_v48 }
  0xf2   :  { %1651 = vst [vmem:[#allocation7 + $0x220] sm:$0xff] %v1523_v7  ;;  %v1396_v61 = vadd.f32 1.0, %v1268_v58  ;;  %v963_v63 = vmul.f32 1.442695, %v760_v55  ;;  %v375_v56 = vmul.f32 %v247_v54, %v247_v54  ;;  %v633_v10 = vsel %vm503_vm12, %v2109_v4, %v2119_v8 }
  0xf3   :  { %v1881_v59 = vpop.eup %1880  ;;  %v1397_v11 = vadd.f32 1.0, %v1269_v60  ;;  %1886 = vpow2.f32 %v961_v62  ;;  %v248_v12 = vsub.f32 %v3297_v52, %v2107_v3  ;;  %vm504_vm13 = vcmp.lt.f32.partialorder %v3297_v52, %v2107_v3  ;;  %v3379_v60 = vld [vmem:[#allocation6 + $0x298] sm:$0xff] }
  0xf4   :  { %v1524_v18 = vsel %vm496_vm5, %v1139_v2, %v1396_v61  ;;  %v1141_v13 = vmul.f32 %v1881_v59, %v2111_v5  ;;  %v1270_v22 = vmul.f32 %v1881_v59, %v2113_v6  ;;  %1888 = vpow2.f32 %v963_v63 }
  0xf5   :  { %1652 = vst [vmem:[#allocation7 + $0x228] sm:$0xff] %v1524_v18  ;;  %v1525_v17 = vsel %vm497_vm6, %v1140_v1, %v1397_v11  ;;  %v761_v57 = vmul.f32 %v633_v10, %v375_v56  ;;  %v376_v23 = vmul.f32 %v248_v12, %v248_v12  ;;  %v634_v24 = vsel %vm504_vm13, %v2109_v4, %v2119_v8  ;;  %v3377_v1 = vld [vmem:[#allocation6 + $0x290] sm:$0xff] }
  0xf6   :  { %1653 = vst [vmem:[#allocation7 + $0x230] sm:$0xff] %v1525_v17  ;;  %v1398_v50 = vadd.f32 1.0, %v1270_v22  ;;  %v249_v30 = vsub.f32 %v3313_v14, %v2107_v3  ;;  %vm505_vm14 = vcmp.lt.f32.partialorder %v3313_v14, %v2107_v3  ;;  %v250_v20 = vsub.f32 %v3315_v19, %v2107_v3 }
  0xf7   :  { %v1883_v25 = vpop.eup %1882  ;;  %v965_v15 = vmul.f32 1.442695, %v761_v57  ;;  %v762_v27 = vmul.f32 %v634_v24, %v376_v23  ;;  %v635_v31 = vsel %vm505_vm14, %v2109_v4, %v2119_v8  ;;  %vm506_vm15 = vcmp.lt.f32.partialorder %v3315_v19, %v2107_v3  ;;  %v3405_v57 = vld [vmem:[#allocation6 + $0x2a0] sm:$0xff] }
  0xf8   :  { %v1526_v33 = vsel %vm498_vm7, %v1141_v13, %v1398_v50  ;;  %v1142_v34 = vmul.f32 %v1883_v25, %v2111_v5  ;;  %v1271_v29 = vmul.f32 %v1883_v25, %v2113_v6  ;;  %v377_v38 = vmul.f32 %v249_v30, %v249_v30 }
  0xf9   :  { %1654 = vst [vmem:[#allocation7 + $0x238] sm:$0xff] %v1526_v33  ;;  %1890 = vpow2.f32 %v965_v15  ;;  %v967_v39 = vmul.f32 1.442695, %v762_v27  ;;  %v378_v41 = vmul.f32 %v250_v20, %v250_v20  ;;  %v636_v35 = vsel %vm506_vm15, %v2109_v4, %v2119_v8 }
  0xfa   :  { %v1885_v42 = vpop.eup %1884  ;;  %v1399_v32 = vadd.f32 1.0, %v1271_v29  ;;  %v763_v43 = vmul.f32 %v635_v31, %v377_v38  ;;  %v251_v28 = vsub.f32 %v3343_v21, %v2107_v3  ;;  %vm507_vm0 = vcmp.lt.f32.partialorder %v3343_v21, %v2107_v3 }
  0xfb   :  { %v1143_v46 = vmul.f32 %v1885_v42, %v2111_v5  ;;  %v1272_v44 = vmul.f32 %v1885_v42, %v2113_v6  ;;  %1892 = vpow2.f32 %v967_v39  ;;  %v764_v47 = vmul.f32 %v636_v35, %v378_v41 }
  0xfc   :  { %v1527_v0 = vsel %vm499_vm8, %v1142_v34, %v1399_v32  ;;  %v969_v49 = vmul.f32 1.442695, %v763_v43  ;;  %v379_v51 = vmul.f32 %v251_v28, %v251_v28  ;;  %v637_v53 = vsel %vm507_vm0, %v2109_v4, %v2119_v8  ;;  %v3423_v34 = vld [vmem:[#allocation6 + $0x2a8] sm:$0xff] }
  0xfd   :  { %v1887_v48 = vpop.eup %1886  ;;  %1655 = vst [vmem:[#allocation7 + $0x240] sm:$0xff] %v1527_v0  ;;  %v1400_v54 = vadd.f32 1.0, %v1272_v44  ;;  %v971_v40 = vmul.f32 1.442695, %v764_v47  ;;  %v252_v2 = vsub.f32 %v3359_v45, %v2107_v3  ;;  %vm508_vm1 = vcmp.lt.f32.partialorder %v3359_v45, %v2107_v3 }
  0xfe   :  { %v1889_v36 = vpop.eup %1888  ;;  %v1144_v58 = vmul.f32 %v1887_v48, %v2111_v5  ;;  %v1273_v55 = vmul.f32 %v1887_v48, %v2113_v6  ;;  %1894 = vpow2.f32 %v969_v49  ;;  %v765_v7 = vmul.f32 %v637_v53, %v379_v51  ;;  %v3441_v53 = vld [vmem:[#allocation6 + $0x2b0] sm:$0xff]  ;;  %v3443_v48 = vld [vmem:[#allocation6 + $0x2b8] sm:$0xff] }
  0xff   :  { %v1528_v62 = vsel %vm500_vm9, %v1143_v46, %v1400_v54  ;;  %v1145_v61 = vmul.f32 %v1889_v36, %v2111_v5  ;;  %v1274_v63 = vmul.f32 %v1889_v36, %v2113_v6  ;;  %1896 = vpow2.f32 %v971_v40 }
 0x100   :  { %1656 = vst [vmem:[#allocation7 + $0x248] sm:$0xff] %v1528_v62  ;;  %v1401_v56 = vadd.f32 1.0, %v1273_v55  ;;  %v973_v10 = vmul.f32 1.442695, %v765_v7  ;;  %v380_v59 = vmul.f32 %v252_v2, %v252_v2  ;;  %v638_v11 = vsel %vm508_vm1, %v2109_v4, %v2119_v8 }
 0x101   :  { %v1402_v12 = vadd.f32 1.0, %v1274_v63  ;;  %v253_v9 = vsub.f32 %v3377_v1, %v2107_v3  ;;  %vm509_vm2 = vcmp.lt.f32.partialorder %v3377_v1, %v2107_v3  ;;  %v254_v18 = vsub.f32 %v3379_v60, %v2107_v3  ;;  %v3461_v63 = vld [vmem:[#allocation6 + $0x2c0] sm:$0xff] }
 0x102   :  { %v1529_v13 = vsel %vm501_vm10, %v1144_v58, %v1401_v56  ;;  %1898 = vpow2.f32 %v973_v10  ;;  %v766_v22 = vmul.f32 %v638_v11, %v380_v59  ;;  %v639_v17 = vsel %vm509_vm2, %v2109_v4, %v2119_v8 }
 0x103   :  { %v1891_v23 = vpop.eup %1890  ;;  %1657 = vst [vmem:[#allocation7 + $0x250] sm:$0xff] %v1529_v13  ;;  %v1530_v24 = vsel %vm502_vm11, %v1145_v61, %v1402_v12  ;;  %v381_v50 = vmul.f32 %v253_v9, %v253_v9  ;;  %v382_v30 = vmul.f32 %v254_v18, %v254_v18  ;;  %vm510_vm3 = vcmp.lt.f32.partialorder %v3379_v60, %v2107_v3 }
 0x104   :  { %1658 = vst [vmem:[#allocation7 + $0x258] sm:$0xff] %v1530_v24  ;;  %v1146_v16 = vmul.f32 %v1891_v23, %v2111_v5  ;;  %v1275_v20 = vmul.f32 %v1891_v23, %v2113_v6  ;;  %v975_v25 = vmul.f32 1.442695, %v766_v22  ;;  %v640_v15 = vsel %vm510_vm3, %v2109_v4, %v2119_v8 }
 0x105   :  { %v1893_v27 = vpop.eup %1892  ;;  %v767_v26 = vmul.f32 %v639_v17, %v381_v50  ;;  %v768_v31 = vmul.f32 %v640_v15, %v382_v30  ;;  %v255_v33 = vsub.f32 %v3405_v57, %v2107_v3  ;;  %vm511_vm4 = vcmp.lt.f32.partialorder %v3405_v57, %v2107_v3  ;;  %v3487_v50 = vld [vmem:[#allocation6 + $0x2c8] sm:$0xff] }
 0x106   :  { %v1403_v29 = vadd.f32 1.0, %v1275_v20  ;;  %v1147_v38 = vmul.f32 %v1893_v27, %v2111_v5  ;;  %v1276_v39 = vmul.f32 %v1893_v27, %v2113_v6  ;;  %1900 = vpow2.f32 %v975_v25 }
 0x107   :  { %v977_v41 = vmul.f32 1.442695, %v767_v26  ;;  %v979_v35 = vmul.f32 1.442695, %v768_v31  ;;  %v383_v42 = vmul.f32 %v255_v33, %v255_v33  ;;  %v641_v32 = vsel %vm511_vm4, %v2109_v4, %v2119_v8 }
 0x108   :  { %v1895_v43 = vpop.eup %1894  ;;  %v1531_v28 = vsel %vm503_vm12, %v1146_v16, %v1403_v29  ;;  %v1404_v46 = vadd.f32 1.0, %v1276_v39  ;;  %v256_v44 = vsub.f32 %v3423_v34, %v2107_v3  ;;  %vm512_vm5 = vcmp.lt.f32.partialorder %v3423_v34, %v2107_v3  ;;  %v3587_v34 = vld [vmem:[#allocation6 + $0x300] sm:$0xff] }
 0x109   :  { %v1897_v47 = vpop.eup %1896  ;;  %1659 = vst [vmem:[#allocation7 + $0x260] sm:$0xff] %v1531_v28  ;;  %v1148_v0 = vmul.f32 %v1895_v43, %v2111_v5  ;;  %v1277_v49 = vmul.f32 %v1895_v43, %v2113_v6  ;;  %1902 = vpow2.f32 %v977_v41  ;;  %v769_v51 = vmul.f32 %v641_v32, %v383_v42  ;;  %v3505_v42 = vld [vmem:[#allocation6 + $0x2d0] sm:$0xff]  ;;  %v3507_v32 = vld [vmem:[#allocation6 + $0x2d8] sm:$0xff] }
 0x10a   :  { %v1532_v37 = vsel %vm504_vm13, %v1147_v38, %v1404_v46  ;;  %v1149_v54 = vmul.f32 %v1897_v47, %v2111_v5  ;;  %v1278_v40 = vmul.f32 %v1897_v47, %v2113_v6  ;;  %1904 = vpow2.f32 %v979_v35 }
 0x10b   :  { %1660 = vst [vmem:[#allocation7 + $0x268] sm:$0xff] %v1532_v37  ;;  %v1405_v2 = vadd.f32 1.0, %v1277_v49  ;;  %v981_v36 = vmul.f32 1.442695, %v769_v51  ;;  %v384_v58 = vmul.f32 %v256_v44, %v256_v44  ;;  %v642_v55 = vsel %vm512_vm5, %v2109_v4, %v2119_v8 }
 0x10c   :  { %v1899_v7 = vpop.eup %1898  ;;  %v1406_v62 = vadd.f32 1.0, %v1278_v40  ;;  %v257_v52 = vsub.f32 %v3441_v53, %v2107_v3  ;;  %vm513_vm6 = vcmp.lt.f32.partialorder %v3441_v53, %v2107_v3  ;;  %v258_v61 = vsub.f32 %v3443_v48, %v2107_v3  ;;  %v3525_v40 = vld [vmem:[#allocation6 + $0x2e0] sm:$0xff] }
 0x10d   :  { %v1533_v56 = vsel %vm505_vm14, %v1148_v0, %v1405_v2  ;;  %v1150_v10 = vmul.f32 %v1899_v7, %v2111_v5  ;;  %v1279_v59 = vmul.f32 %v1899_v7, %v2113_v6  ;;  %1906 = vpow2.f32 %v981_v36 }
 0x10e   :  { %1661 = vst [vmem:[#allocation7 + $0x270] sm:$0xff] %v1533_v56  ;;  %v1534_v11 = vsel %vm506_vm15, %v1149_v54, %v1406_v62  ;;  %v770_v12 = vmul.f32 %v642_v55, %v384_v58  ;;  %v385_v9 = vmul.f32 %v257_v52, %v257_v52  ;;  %v643_v18 = vsel %vm513_vm6, %v2109_v4, %v2119_v8 }
 0x10f   :  { %1662 = vst [vmem:[#allocation7 + $0x278] sm:$0xff] %v1534_v11  ;;  %v1407_v14 = vadd.f32 1.0, %v1279_v59  ;;  %v386_v13 = vmul.f32 %v258_v61, %v258_v61  ;;  %vm514_vm7 = vcmp.lt.f32.partialorder %v3443_v48, %v2107_v3  ;;  %v259_v22 = vsub.f32 %v3461_v63, %v2107_v3  ;;  %v3551_v11 = vld [vmem:[#allocation6 + $0x2e8] sm:$0xff] }
 0x110   :  { %v1901_v17 = vpop.eup %1900  ;;  %v983_v19 = vmul.f32 1.442695, %v770_v12  ;;  %v771_v23 = vmul.f32 %v643_v18, %v385_v9  ;;  %v644_v24 = vsel %vm514_vm7, %v2109_v4, %v2119_v8  ;;  %vm515_vm8 = vcmp.lt.f32.partialorder %v3461_v63, %v2107_v3 }
 0x111   :  { %v1535_v30 = vsel %vm507_vm0, %v1150_v10, %v1407_v14  ;;  %v1151_v16 = vmul.f32 %v1901_v17, %v2111_v5  ;;  %v1280_v20 = vmul.f32 %v1901_v17, %v2113_v6  ;;  %v772_v25 = vmul.f32 %v644_v24, %v386_v13 }
 0x112   :  { %1663 = vst [vmem:[#allocation7 + $0x280] sm:$0xff] %v1535_v30  ;;  %1908 = vpow2.f32 %v983_v19  ;;  %v985_v15 = vmul.f32 1.442695, %v771_v23  ;;  %v387_v27 = vmul.f32 %v259_v22, %v259_v22  ;;  %v645_v26 = vsel %vm515_vm8, %v2109_v4, %v2119_v8 }
 0x113   :  { %v1903_v31 = vpop.eup %1902  ;;  %v1408_v33 = vadd.f32 1.0, %v1280_v20  ;;  %v987_v29 = vmul.f32 1.442695, %v772_v25  ;;  %v260_v21 = vsub.f32 %v3487_v50, %v2107_v3  ;;  %vm516_vm9 = vcmp.lt.f32.partialorder %v3487_v50, %v2107_v3 }
 0x114   :  { %v1905_v38 = vpop.eup %1904  ;;  %v1152_v39 = vmul.f32 %v1903_v31, %v2111_v5  ;;  %v1281_v41 = vmul.f32 %v1903_v31, %v2113_v6  ;;  %1910 = vpow2.f32 %v985_v15  ;;  %v773_v35 = vmul.f32 %v645_v26, %v387_v27  ;;  %v3569_v27 = vld [vmem:[#allocation6 + $0x2f0] sm:$0xff] }
 0x115   :  { %v1536_v43 = vsel %vm508_vm1, %v1151_v16, %v1408_v33  ;;  %v1153_v28 = vmul.f32 %v1905_v38, %v2111_v5  ;;  %v1282_v46 = vmul.f32 %v1905_v38, %v2113_v6  ;;  %1912 = vpow2.f32 %v987_v29 }
 0x116   :  { %1664 = vst [vmem:[#allocation7 + $0x288] sm:$0xff] %v1536_v43  ;;  %v1409_v44 = vadd.f32 1.0, %v1281_v41  ;;  %v989_v47 = vmul.f32 1.442695, %v773_v35  ;;  %v388_v0 = vmul.f32 %v260_v21, %v260_v21  ;;  %v646_v49 = vsel %vm516_vm9, %v2109_v4, %v2119_v8  ;;  %v3581_v41 = vld [vmem:[#allocation6 + $0x2f8] sm:$0xff] }
 0x117   :  { %v1907_v51 = vpop.eup %1906  ;;  %v1410_v37 = vadd.f32 1.0, %v1282_v46  ;;  %v261_v45 = vsub.f32 %v3505_v42, %v2107_v3  ;;  %vm517_vm10 = vcmp.lt.f32.partialorder %v3505_v42, %v2107_v3  ;;  %v262_v54 = vsub.f32 %v3507_v32, %v2107_v3 }
 0x118   :  { %v1537_v2 = vsel %vm509_vm2, %v1152_v39, %v1409_v44  ;;  %v1154_v36 = vmul.f32 %v1907_v51, %v2111_v5  ;;  %v1283_v58 = vmul.f32 %v1907_v51, %v2113_v6  ;;  %1914 = vpow2.f32 %v989_v47 }
 0x119   :  { %1665 = vst [vmem:[#allocation7 + $0x290] sm:$0xff] %v1537_v2  ;;  %v1538_v55 = vsel %vm510_vm3, %v1153_v28, %v1410_v37  ;;  %v774_v7 = vmul.f32 %v646_v49, %v388_v0  ;;  %v389_v62 = vmul.f32 %v261_v45, %v261_v45  ;;  %v647_v52 = vsel %vm517_vm10, %v2109_v4, %v2119_v8 }
 0x11a   :  { %1666 = vst [vmem:[#allocation7 + $0x298] sm:$0xff] %v1538_v55  ;;  %v1411_v1 = vadd.f32 1.0, %v1283_v58  ;;  %v390_v61 = vmul.f32 %v262_v54, %v262_v54  ;;  %vm518_vm11 = vcmp.lt.f32.partialorder %v3507_v32, %v2107_v3  ;;  %v263_v56 = vsub.f32 %v3525_v40, %v2107_v3  ;;  %v3615_v55 = vld [vmem:[#allocation6 + $0x308] sm:$0xff] }
 0x11b   :  { %v991_v10 = vmul.f32 1.442695, %v774_v7  ;;  %v775_v60 = vmul.f32 %v647_v52, %v389_v62  ;;  %v648_v59 = vsel %vm518_vm11, %v2109_v4, %v2119_v8  ;;  %vm519_vm12 = vcmp.lt.f32.partialorder %v3525_v40, %v2107_v3  ;;  %v3617_v7 = vld [vmem:[#allocation6 + $0x310] sm:$0xff] }
 0x11c   :  { %v1909_v12 = vpop.eup %1908  ;;  %v1539_v9 = vsel %vm511_vm4, %v1154_v36, %v1411_v1  ;;  %v776_v18 = vmul.f32 %v648_v59, %v390_v61  ;;  %v391_v14 = vmul.f32 %v263_v56, %v263_v56  ;;  %v649_v13 = vsel %vm519_vm12, %v2109_v4, %v2119_v8 }
 0x11d   :  { %1667 = vst [vmem:[#allocation7 + $0x2a0] sm:$0xff] %v1539_v9  ;;  %v1155_v22 = vmul.f32 %v1909_v12, %v2111_v5  ;;  %v1284_v17 = vmul.f32 %v1909_v12, %v2113_v6  ;;  %1916 = vpow2.f32 %v991_v10  ;;  %v993_v19 = vmul.f32 1.442695, %v775_v60 }
 0x11e   :  { %v1911_v23 = vpop.eup %1910  ;;  %v995_v24 = vmul.f32 1.442695, %v776_v18  ;;  %v777_v30 = vmul.f32 %v649_v13, %v391_v14  ;;  %v264_v57 = vsub.f32 %v3551_v11, %v2107_v3  ;;  %vm520_vm13 = vcmp.lt.f32.partialorder %v3551_v11, %v2107_v3 }
 0x11f   :  { %v1913_v16 = vpop.eup %1912  ;;  %v1412_v20 = vadd.f32 1.0, %v1284_v17  ;;  %v1156_v25 = vmul.f32 %v1911_v23, %v2111_v5  ;;  %v1285_v15 = vmul.f32 %v1911_v23, %v2113_v6  ;;  %1918 = vpow2.f32 %v993_v19 }
 0x120   :  { %v1157_v26 = vmul.f32 %v1913_v16, %v2111_v5  ;;  %v1286_v31 = vmul.f32 %v1913_v16, %v2113_v6  ;;  %1920 = vpow2.f32 %v995_v24  ;;  %v997_v33 = vmul.f32 1.442695, %v777_v30 }
 0x121   :  { %v1540_v29 = vsel %vm512_vm5, %v1155_v22, %v1412_v20  ;;  %v1413_v21 = vadd.f32 1.0, %v1285_v15  ;;  %v392_v38 = vmul.f32 %v264_v57, %v264_v57  ;;  %v650_v39 = vsel %vm520_vm13, %v2109_v4, %v2119_v8 }
 0x122   :  { %v1915_v35 = vpop.eup %1914  ;;  %1668 = vst [vmem:[#allocation7 + $0x2a8] sm:$0xff] %v1540_v29  ;;  %v1414_v43 = vadd.f32 1.0, %v1286_v31  ;;  %1922 = vpow2.f32 %v997_v33  ;;  %v265_v28 = vsub.f32 %v3569_v27, %v2107_v3  ;;  %vm521_vm14 = vcmp.lt.f32.partialorder %v3569_v27, %v2107_v3 }
 0x123   :  { %v1541_v46 = vsel %vm513_vm6, %v1156_v25, %v1413_v21  ;;  %v1158_v44 = vmul.f32 %v1915_v35, %v2111_v5  ;;  %v1287_v47 = vmul.f32 %v1915_v35, %v2113_v6  ;;  %v778_v0 = vmul.f32 %v650_v39, %v392_v38  ;;  %v3651_v21 = vld [vmem:[#allocation6 + $0x320] sm:$0xff] }
 0x124   :  { %1669 = vst [vmem:[#allocation7 + $0x2b0] sm:$0xff] %v1541_v46  ;;  %v1542_v49 = vsel %vm514_vm7, %v1157_v26, %v1414_v43  ;;  %v393_v51 = vmul.f32 %v265_v28, %v265_v28  ;;  %v651_v37 = vsel %vm521_vm14, %v2109_v4, %v2119_v8  ;;  %v266_v53 = vsub.f32 %v3581_v41, %v2107_v3  ;;  %v3647_v26 = vld [vmem:[#allocation6 + $0x318] sm:$0xff] }
 0x125   :  { %1670 = vst [vmem:[#allocation7 + $0x2b8] sm:$0xff] %v1542_v49  ;;  %v1415_v45 = vadd.f32 1.0, %v1287_v47  ;;  %v999_v54 = vmul.f32 1.442695, %v778_v0  ;;  %vm522_vm15 = vcmp.lt.f32.partialorder %v3581_v41, %v2107_v3  ;;  %v267_v48 = vsub.f32 %v3587_v34, %v2107_v3 }
 0x126   :  { %v779_v2 = vmul.f32 %v651_v37, %v393_v51  ;;  %v394_v36 = vmul.f32 %v266_v53, %v266_v53  ;;  %v652_v58 = vsel %vm522_vm15, %v2109_v4, %v2119_v8  ;;  %vm523_vm0 = vcmp.lt.f32.partialorder %v3587_v34, %v2107_v3  ;;  %v3682_v53 = vld [vmem:[#allocation6 + $0x330] sm:$0xff] }
 0x127   :  { %v1917_v62 = vpop.eup %1916  ;;  %v1543_v52 = vsel %vm515_vm8, %v1158_v44, %v1415_v45  ;;  %1924 = vpow2.f32 %v999_v54  ;;  %v395_v1 = vmul.f32 %v267_v48, %v267_v48  ;;  %v653_v61 = vsel %vm523_vm0, %v2109_v4, %v2119_v8  ;;  %v3672_v44 = vld [vmem:[#allocation6 + $0x328] sm:$0xff] }
 0x128   :  { %1671 = vst [vmem:[#allocation7 + $0x2c0] sm:$0xff] %v1543_v52  ;;  %v1159_v56 = vmul.f32 %v1917_v62, %v2111_v5  ;;  %v1288_v10 = vmul.f32 %v1917_v62, %v2113_v6  ;;  %v1001_v60 = vmul.f32 1.442695, %v779_v2  ;;  %v780_v59 = vmul.f32 %v652_v58, %v394_v36 }
 0x129   :  { %v1919_v12 = vpop.eup %1918  ;;  %v781_v9 = vmul.f32 %v653_v61, %v395_v1  ;;  %v268_v63 = vsub.f32 %v3615_v55, %v2107_v3  ;;  %vm524_vm1 = vcmp.lt.f32.partialorder %v3615_v55, %v2107_v3  ;;  %v269_v18 = vsub.f32 %v3617_v7, %v2107_v3 }
 0x12a   :  { %v1921_v14 = vpop.eup %1920  ;;  %v1416_v13 = vadd.f32 1.0, %v1288_v10  ;;  %v1160_v22 = vmul.f32 %v1919_v12, %v2111_v5  ;;  %v1289_v17 = vmul.f32 %v1919_v12, %v2113_v6  ;;  %1926 = vpow2.f32 %v1001_v60 }
 0x12b   :  { %v1161_v19 = vmul.f32 %v1921_v14, %v2111_v5  ;;  %v1290_v23 = vmul.f32 %v1921_v14, %v2113_v6  ;;  %v1003_v24 = vmul.f32 1.442695, %v780_v59  ;;  %v1005_v30 = vmul.f32 1.442695, %v781_v9 }
 0x12c   :  { %v1923_v57 = vpop.eup %1922  ;;  %v1544_v16 = vsel %vm516_vm9, %v1159_v56, %v1416_v13  ;;  %v1417_v20 = vadd.f32 1.0, %v1289_v17  ;;  %v396_v25 = vmul.f32 %v268_v63, %v268_v63  ;;  %v654_v15 = vsel %vm524_vm1, %v2109_v4, %v2119_v8 }
 0x12d   :  { %1672 = vst [vmem:[#allocation7 + $0x2c8] sm:$0xff] %v1544_v16  ;;  %v1418_v31 = vadd.f32 1.0, %v1290_v23  ;;  %v1162_v33 = vmul.f32 %v1923_v57, %v2111_v5  ;;  %v1291_v29 = vmul.f32 %v1923_v57, %v2113_v6  ;;  %1928 = vpow2.f32 %v1003_v24  ;;  %v3713_v23 = vld [vmem:[#allocation6 + $0x338] sm:$0xff]  ;;  %v3715_v24 = vld [vmem:[#allocation6 + $0x340] sm:$0xff] }
 0x12e   :  { %v1545_v50 = vsel %vm517_vm10, %v1160_v22, %v1417_v20  ;;  %1930 = vpow2.f32 %v1005_v30  ;;  %v782_v38 = vmul.f32 %v654_v15, %v396_v25  ;;  %v397_v39 = vmul.f32 %v269_v18, %v269_v18 }
 0x12f   :  { %1673 = vst [vmem:[#allocation7 + $0x2d0] sm:$0xff] %v1545_v50  ;;  %v1546_v35 = vsel %vm518_vm11, %v1161_v19, %v1418_v31  ;;  %v1419_v43 = vadd.f32 1.0, %v1291_v29  ;;  %vm525_vm2 = vcmp.lt.f32.partialorder %v3617_v7, %v2107_v3  ;;  %v270_v28 = vsub.f32 %v3647_v26, %v2107_v3  ;;  %v3733_v50 = vld [vmem:[#allocation6 + $0x348] sm:$0xff] }
 0x130   :  { %1674 = vst [vmem:[#allocation7 + $0x2d8] sm:$0xff] %v1546_v35  ;;  %v1007_v46 = vmul.f32 1.442695, %v782_v38  ;;  %v655_v42 = vsel %vm525_vm2, %v2109_v4, %v2119_v8  ;;  %vm526_vm3 = vcmp.lt.f32.partialorder %v3647_v26, %v2107_v3  ;;  %v271_v32 = vsub.f32 %v3651_v21, %v2107_v3 }
 0x131   :  { %v1925_v47 = vpop.eup %1924  ;;  %v1547_v0 = vsel %vm519_vm12, %v1162_v33, %v1419_v43  ;;  %v783_v49 = vmul.f32 %v655_v42, %v397_v39  ;;  %v398_v51 = vmul.f32 %v270_v28, %v270_v28  ;;  %v656_v37 = vsel %vm526_vm3, %v2109_v4, %v2119_v8 }
 0x132   :  { %1675 = vst [vmem:[#allocation7 + $0x2e0] sm:$0xff] %v1547_v0  ;;  %v1163_v45 = vmul.f32 %v1925_v47, %v2111_v5  ;;  %v1292_v54 = vmul.f32 %v1925_v47, %v2113_v6  ;;  %1932 = vpow2.f32 %v1007_v46  ;;  %v399_v48 = vmul.f32 %v271_v32, %v271_v32  ;;  %v3752_v0 = vld [vmem:[#allocation6 + $0x350] sm:$0xff] }
 0x133   :  { %v1009_v2 = vmul.f32 1.442695, %v783_v49  ;;  %v784_v40 = vmul.f32 %v656_v37, %v398_v51  ;;  %vm527_vm4 = vcmp.lt.f32.partialorder %v3651_v21, %v2107_v3  ;;  %v272_v36 = vsub.f32 %v3672_v44, %v2107_v3 }
 0x134   :  { %v1927_v58 = vpop.eup %1926  ;;  %v1420_v62 = vadd.f32 1.0, %v1292_v54  ;;  %v657_v52 = vsel %vm527_vm4, %v2109_v4, %v2119_v8  ;;  %vm528_vm5 = vcmp.lt.f32.partialorder %v3672_v44, %v2107_v3  ;;  %v273_v1 = vsub.f32 %v3682_v53, %v2107_v3 }
 0x135   :  { %v1164_v61 = vmul.f32 %v1927_v58, %v2111_v5  ;;  %v1293_v56 = vmul.f32 %v1927_v58, %v2113_v6  ;;  %1934 = vpow2.f32 %v1009_v2  ;;  %v1011_v10 = vmul.f32 1.442695, %v784_v40 }
 0x136   :  { %v1548_v60 = vsel %vm520_vm13, %v1163_v45, %v1420_v62  ;;  %v785_v59 = vmul.f32 %v657_v52, %v399_v48  ;;  %v400_v12 = vmul.f32 %v272_v36, %v272_v36  ;;  %v658_v9 = vsel %vm528_vm5, %v2109_v4, %v2119_v8 }
 0x137   :  { %v1929_v63 = vpop.eup %1928  ;;  %1676 = vst [vmem:[#allocation7 + $0x2e8] sm:$0xff] %v1548_v60  ;;  %v1421_v18 = vadd.f32 1.0, %v1293_v56  ;;  %1936 = vpow2.f32 %v1011_v10  ;;  %v401_v14 = vmul.f32 %v273_v1, %v273_v1  ;;  %vm529_vm6 = vcmp.lt.f32.partialorder %v3682_v53, %v2107_v3 }
 0x138   :  { %v1931_v13 = vpop.eup %1930  ;;  %v1165_v11 = vmul.f32 %v1929_v63, %v2111_v5  ;;  %v1294_v22 = vmul.f32 %v1929_v63, %v2113_v6  ;;  %v1013_v17 = vmul.f32 1.442695, %v785_v59  ;;  %v786_v19 = vmul.f32 %v658_v9, %v400_v12  ;;  %v3777_v59 = vld [vmem:[#allocation6 + $0x358] sm:$0xff]  ;;  %v3779_v12 = vld [vmem:[#allocation6 + $0x360] sm:$0xff] }
 0x139   :  { %v1549_v30 = vsel %vm521_vm14, %v1164_v61, %v1421_v18  ;;  %v1166_v57 = vmul.f32 %v1931_v13, %v2111_v5  ;;  %v1295_v16 = vmul.f32 %v1931_v13, %v2113_v6  ;;  %v659_v20 = vsel %vm529_vm6, %v2109_v4, %v2119_v8 }
 0x13a   :  { %1677 = vst [vmem:[#allocation7 + $0x2f0] sm:$0xff] %v1549_v30  ;;  %v1422_v25 = vadd.f32 1.0, %v1294_v22  ;;  %1938 = vpow2.f32 %v1013_v17  ;;  %v1015_v15 = vmul.f32 1.442695, %v786_v19  ;;  %v787_v31 = vmul.f32 %v659_v20, %v401_v14 }
 0x13b   :  { %v1423_v33 = vadd.f32 1.0, %v1295_v16  ;;  %v274_v27 = vsub.f32 %v3713_v23, %v2107_v3  ;;  %vm530_vm7 = vcmp.lt.f32.partialorder %v3713_v23, %v2107_v3  ;;  %v275_v29 = vsub.f32 %v3715_v24, %v2107_v3 }
 0x13c   :  { %v1933_v38 = vpop.eup %1932  ;;  %v1550_v39 = vsel %vm522_vm15, %v1165_v11, %v1422_v25  ;;  %1940 = vpow2.f32 %v1015_v15  ;;  %v1017_v35 = vmul.f32 1.442695, %v787_v31  ;;  %v660_v43 = vsel %vm530_vm7, %v2109_v4, %v2119_v8  ;;  %v3802_v15 = vld [vmem:[#allocation6 + $0x368] sm:$0xff] }
 0x13d   :  { %1678 = vst [vmem:[#allocation7 + $0x2f8] sm:$0xff] %v1550_v39  ;;  %v1551_v28 = vsel %vm523_vm0, %v1166_v57, %v1423_v33  ;;  %v1167_v46 = vmul.f32 %v1933_v38, %v2111_v5  ;;  %v1296_v42 = vmul.f32 %v1933_v38, %v2113_v6  ;;  %v402_v32 = vmul.f32 %v274_v27, %v274_v27 }
 0x13e   :  { %1679 = vst [vmem:[#allocation7 + $0x300] sm:$0xff] %v1551_v28  ;;  %1942 = vpow2.f32 %v1017_v35  ;;  %v403_v41 = vmul.f32 %v275_v29, %v275_v29  ;;  %vm531_vm8 = vcmp.lt.f32.partialorder %v3715_v24, %v2107_v3  ;;  %v276_v47 = vsub.f32 %v3733_v50, %v2107_v3 }
 0x13f   :  { %v1935_v49 = vpop.eup %1934  ;;  %v1424_v51 = vadd.f32 1.0, %v1296_v42  ;;  %v788_v34 = vmul.f32 %v660_v43, %v402_v32  ;;  %v661_v37 = vsel %vm531_vm8, %v2109_v4, %v2119_v8  ;;  %vm532_vm9 = vcmp.lt.f32.partialorder %v3733_v50, %v2107_v3  ;;  %v3818_v42 = vld [vmem:[#allocation6 + $0x370] sm:$0xff]  ;;  %v3820_v32 = vld [vmem:[#allocation6 + $0x378] sm:$0xff] }
 0x140   :  { %v1168_v45 = vmul.f32 %v1935_v49, %v2111_v5  ;;  %v1297_v54 = vmul.f32 %v1935_v49, %v2113_v6  ;;  %v789_v48 = vmul.f32 %v661_v37, %v403_v41  ;;  %v404_v2 = vmul.f32 %v276_v47, %v276_v47 }
 0x141   :  { %v1937_v40 = vpop.eup %1936  ;;  %v1552_v36 = vsel %vm524_vm1, %v1167_v46, %v1424_v51  ;;  %v1019_v58 = vmul.f32 1.442695, %v788_v34  ;;  %v662_v62 = vsel %vm532_vm9, %v2109_v4, %v2119_v8  ;;  %v277_v52 = vsub.f32 %v3752_v0, %v2107_v3 }
 0x142   :  { %1680 = vst [vmem:[#allocation7 + $0x308] sm:$0xff] %v1552_v36  ;;  %v1425_v1 = vadd.f32 1.0, %v1297_v54  ;;  %v1169_v61 = vmul.f32 %v1937_v40, %v2111_v5  ;;  %v1298_v56 = vmul.f32 %v1937_v40, %v2113_v6  ;;  %v1021_v10 = vmul.f32 1.442695, %v789_v48 }
 0x143   :  { %1944 = vpow2.f32 %v1019_v58  ;;  %v790_v55 = vmul.f32 %v662_v62, %v404_v2  ;;  %v405_v60 = vmul.f32 %v277_v52, %v277_v52  ;;  %vm533_vm10 = vcmp.lt.f32.partialorder %v3752_v0, %v2107_v3 }
 0x144   :  { %v1939_v9 = vpop.eup %1938  ;;  %v1553_v63 = vsel %vm525_vm2, %v1168_v45, %v1425_v1  ;;  %v1426_v18 = vadd.f32 1.0, %v1298_v56  ;;  %1946 = vpow2.f32 %v1021_v10  ;;  %v663_v14 = vsel %vm533_vm10, %v2109_v4, %v2119_v8 }
 0x145   :  { %1681 = vst [vmem:[#allocation7 + $0x310] sm:$0xff] %v1553_v63  ;;  %v1170_v13 = vmul.f32 %v1939_v9, %v2111_v5  ;;  %v1299_v11 = vmul.f32 %v1939_v9, %v2113_v6  ;;  %v1023_v22 = vmul.f32 1.442695, %v790_v55  ;;  %v791_v17 = vmul.f32 %v663_v14, %v405_v60  ;;  %v3859_v14 = vld [vmem:[#allocation6 + $0x388] sm:$0xff] }
 0x146   :  { %v1941_v19 = vpop.eup %1940  ;;  %v1554_v7 = vsel %vm526_vm3, %v1169_v61, %v1426_v18  ;;  %v278_v30 = vsub.f32 %v3777_v59, %v2107_v3  ;;  %vm534_vm11 = vcmp.lt.f32.partialorder %v3777_v59, %v2107_v3  ;;  %v279_v57 = vsub.f32 %v3779_v12, %v2107_v3  ;;  %v3857_v18 = vld [vmem:[#allocation6 + $0x380] sm:$0xff] }
 0x147   :  { %1682 = vst [vmem:[#allocation7 + $0x318] sm:$0xff] %v1554_v7  ;;  %v1427_v16 = vadd.f32 1.0, %v1299_v11  ;;  %v1171_v20 = vmul.f32 %v1941_v19, %v2111_v5  ;;  %v1300_v25 = vmul.f32 %v1941_v19, %v2113_v6  ;;  %1948 = vpow2.f32 %v1023_v22 }
 0x148   :  { %v1943_v26 = vpop.eup %1942  ;;  %v1025_v31 = vmul.f32 1.442695, %v791_v17  ;;  %v406_v33 = vmul.f32 %v278_v30, %v278_v30  ;;  %v664_v27 = vsel %vm534_vm11, %v2109_v4, %v2119_v8  ;;  %v407_v29 = vmul.f32 %v279_v57, %v279_v57 }
 0x149   :  { %v1555_v38 = vsel %vm527_vm4, %v1170_v13, %v1427_v16  ;;  %v1428_v39 = vadd.f32 1.0, %v1300_v25  ;;  %v1172_v35 = vmul.f32 %v1943_v26, %v2111_v5  ;;  %v1301_v43 = vmul.f32 %v1943_v26, %v2113_v6  ;;  %v3880_v25 = vld [vmem:[#allocation6 + $0x390] sm:$0xff] }
 0x14a   :  { %1683 = vst [vmem:[#allocation7 + $0x320] sm:$0xff] %v1555_v38  ;;  %1950 = vpow2.f32 %v1025_v31  ;;  %v792_v28 = vmul.f32 %v664_v27, %v406_v33  ;;  %vm535_vm12 = vcmp.lt.f32.partialorder %v3779_v12, %v2107_v3  ;;  %v280_v46 = vsub.f32 %v3802_v15, %v2107_v3  ;;  %v3884_v33 = vld [vmem:[#allocation6 + $0x398] sm:$0xff] }
 0x14b   :  { %v1556_v21 = vsel %vm528_vm5, %v1171_v20, %v1428_v39  ;;  %v1429_v41 = vadd.f32 1.0, %v1301_v43  ;;  %v665_v47 = vsel %vm535_vm12, %v2109_v4, %v2119_v8  ;;  %vm536_vm13 = vcmp.lt.f32.partialorder %v3802_v15, %v2107_v3 }
 0x14c   :  { %1684 = vst [vmem:[#allocation7 + $0x328] sm:$0xff] %v1556_v21  ;;  %v1027_v49 = vmul.f32 1.442695, %v792_v28  ;;  %v793_v51 = vmul.f32 %v665_v47, %v407_v29  ;;  %v408_v34 = vmul.f32 %v280_v46, %v280_v46  ;;  %v666_v44 = vsel %vm536_vm13, %v2109_v4, %v2119_v8 }
 0x14d   :  { %v1945_v37 = vpop.eup %1944  ;;  %v1557_v45 = vsel %vm529_vm6, %v1172_v35, %v1429_v41  ;;  %v281_v54 = vsub.f32 %v3818_v42, %v2107_v3  ;;  %vm537_vm14 = vcmp.lt.f32.partialorder %v3818_v42, %v2107_v3  ;;  %v282_v48 = vsub.f32 %v3820_v32, %v2107_v3 }
 0x14e   :  { %v1947_v2 = vpop.eup %1946  ;;  %1685 = vst [vmem:[#allocation7 + $0x330] sm:$0xff] %v1557_v45  ;;  %v1173_v40 = vmul.f32 %v1945_v37, %v2111_v5  ;;  %v1302_v36 = vmul.f32 %v1945_v37, %v2113_v6  ;;  %1952 = vpow2.f32 %v1027_v49  ;;  %v1029_v58 = vmul.f32 1.442695, %v793_v51 }
 0x14f   :  { %v1174_v53 = vmul.f32 %v1947_v2, %v2111_v5  ;;  %v1303_v62 = vmul.f32 %v1947_v2, %v2113_v6  ;;  %v794_v52 = vmul.f32 %v666_v44, %v408_v34  ;;  %v409_v1 = vmul.f32 %v281_v54, %v281_v54  ;;  %v3912_v34 = vld [vmem:[#allocation6 + $0x3a0] sm:$0xff] }
 0x150   :  { %v1430_v61 = vadd.f32 1.0, %v1302_v36  ;;  %1954 = vpow2.f32 %v1029_v58  ;;  %v667_v56 = vsel %vm537_vm14, %v2109_v4, %v2119_v8  ;;  %v410_v10 = vmul.f32 %v282_v48, %v282_v48 }
 0x151   :  { %v1949_v55 = vpop.eup %1948  ;;  %v1431_v60 = vadd.f32 1.0, %v1303_v62  ;;  %v1031_v9 = vmul.f32 1.442695, %v794_v52  ;;  %v795_v63 = vmul.f32 %v667_v56, %v409_v1  ;;  %vm538_vm15 = vcmp.lt.f32.partialorder %v3820_v32, %v2107_v3  ;;  %v3925_v62 = vld [vmem:[#allocation6 + $0x3a8] sm:$0xff] }
 0x152   :  { %v1558_v13 = vsel %vm530_vm7, %v1173_v40, %v1430_v61  ;;  %v1175_v11 = vmul.f32 %v1949_v55, %v2111_v5  ;;  %v1304_v22 = vmul.f32 %v1949_v55, %v2113_v6  ;;  %v668_v17 = vsel %vm538_vm15, %v2109_v4, %v2119_v8 }
 0x153   :  { %1686 = vst [vmem:[#allocation7 + $0x338] sm:$0xff] %v1558_v13  ;;  %v1559_v19 = vsel %vm531_vm8, %v1174_v53, %v1431_v60  ;;  %1956 = vpow2.f32 %v1031_v9  ;;  %v1033_v7 = vmul.f32 1.442695, %v795_v63  ;;  %v796_v30 = vmul.f32 %v668_v17, %v410_v10 }
 0x154   :  { %v1951_v23 = vpop.eup %1950  ;;  %1687 = vst [vmem:[#allocation7 + $0x340] sm:$0xff] %v1559_v19  ;;  %v1432_v57 = vadd.f32 1.0, %v1304_v22  ;;  %v283_v16 = vsub.f32 %v3857_v18, %v2107_v3  ;;  %vm539_vm0 = vcmp.lt.f32.partialorder %v3857_v18, %v2107_v3  ;;  %v284_v20 = vsub.f32 %v3859_v14, %v2107_v3 }
 0x155   :  { %v1176_v24 = vmul.f32 %v1951_v23, %v2111_v5  ;;  %v1305_v26 = vmul.f32 %v1951_v23, %v2113_v6  ;;  %1958 = vpow2.f32 %v1033_v7  ;;  %v1035_v31 = vmul.f32 1.442695, %v796_v30  ;;  %v3946_v7 = vld [vmem:[#allocation6 + $0x3b0] sm:$0xff] }
 0x156   :  { %v1560_v27 = vsel %vm532_vm9, %v1175_v11, %v1432_v57  ;;  %v411_v29 = vmul.f32 %v283_v16, %v283_v16  ;;  %v669_v38 = vsel %vm539_vm0, %v2109_v4, %v2119_v8  ;;  %v412_v39 = vmul.f32 %v284_v20, %v284_v20 }
 0x157   :  { %1688 = vst [vmem:[#allocation7 + $0x348] sm:$0xff] %v1560_v27  ;;  %v1433_v35 = vadd.f32 1.0, %v1305_v26  ;;  %1960 = vpow2.f32 %v1035_v31  ;;  %vm540_vm1 = vcmp.lt.f32.partialorder %v3859_v14, %v2107_v3  ;;  %v285_v43 = vsub.f32 %v3880_v25, %v2107_v3  ;;  %v3960_v31 = vld [vmem:[#allocation6 + $0x3b8] sm:$0xff] }
 0x158   :  { %v1953_v28 = vpop.eup %1952  ;;  %v797_v50 = vmul.f32 %v669_v38, %v411_v29  ;;  %v670_v46 = vsel %vm540_vm1, %v2109_v4, %v2119_v8  ;;  %vm541_vm2 = vcmp.lt.f32.partialorder %v3880_v25, %v2107_v3  ;;  %v286_v21 = vsub.f32 %v3884_v33, %v2107_v3  ;;  %v3969_v38 = vld [vmem:[#allocation6 + $0x3c0] sm:$0xff]  ;;  %v4024_v14 = vld [vmem:[#allocation6 + $0x3d8] sm:$0xff] }
 0x159   :  { %v1561_v41 = vsel %vm533_vm10, %v1176_v24, %v1433_v35  ;;  %v1177_v47 = vmul.f32 %v1953_v28, %v2111_v5  ;;  %v1306_v49 = vmul.f32 %v1953_v28, %v2113_v6  ;;  %v798_v51 = vmul.f32 %v670_v46, %v412_v39 }
 0x15a   :  { %v1955_v44 = vpop.eup %1954  ;;  %1689 = vst [vmem:[#allocation7 + $0x350] sm:$0xff] %v1561_v41  ;;  %v1037_v37 = vmul.f32 1.442695, %v797_v50  ;;  %v413_v45 = vmul.f32 %v285_v43, %v285_v43  ;;  %v671_v54 = vsel %vm541_vm2, %v2109_v4, %v2119_v8  ;;  %v414_v48 = vmul.f32 %v286_v21, %v286_v21 }
 0x15b   :  { %v1434_v0 = vadd.f32 1.0, %v1306_v49  ;;  %v1178_v2 = vmul.f32 %v1955_v44, %v2111_v5  ;;  %v1307_v40 = vmul.f32 %v1955_v44, %v2113_v6  ;;  %v1039_v36 = vmul.f32 1.442695, %v798_v51 }
 0x15c   :  { %1962 = vpow2.f32 %v1037_v37  ;;  %v799_v58 = vmul.f32 %v671_v54, %v413_v45  ;;  %vm542_vm3 = vcmp.lt.f32.partialorder %v3884_v33, %v2107_v3  ;;  %v287_v53 = vsub.f32 %v3912_v34, %v2107_v3  ;;  %v3992_v54 = vld [vmem:[#allocation6 + $0x3c8] sm:$0xff] }
 0x15d   :  { %v1957_v52 = vpop.eup %1956  ;;  %v1562_v1 = vsel %vm534_vm11, %v1177_v47, %v1434_v0  ;;  %v1435_v61 = vadd.f32 1.0, %v1307_v40  ;;  %1964 = vpow2.f32 %v1039_v36  ;;  %v672_v56 = vsel %vm542_vm3, %v2109_v4, %v2119_v8 }
 0x15e   :  { %1690 = vst [vmem:[#allocation7 + $0x358] sm:$0xff] %v1562_v1  ;;  %v1179_v10 = vmul.f32 %v1957_v52, %v2111_v5  ;;  %v1308_v55 = vmul.f32 %v1957_v52, %v2113_v6  ;;  %v1041_v60 = vmul.f32 1.442695, %v799_v58  ;;  %v800_v9 = vmul.f32 %v672_v56, %v414_v48  ;;  %v4005_v56 = vld [vmem:[#allocation6 + $0x3d0] sm:$0xff] }
 0x15f   :  { %v1959_v63 = vpop.eup %1958  ;;  %v1563_v59 = vsel %vm535_vm12, %v1178_v2, %v1435_v61  ;;  %v415_v13 = vmul.f32 %v287_v53, %v287_v53  ;;  %vm543_vm4 = vcmp.lt.f32.partialorder %v3912_v34, %v2107_v3  ;;  %v288_v11 = vsub.f32 %v3925_v62, %v2107_v3 }
 0x160   :  { %1691 = vst [vmem:[#allocation7 + $0x360] sm:$0xff] %v1563_v59  ;;  %v1436_v22 = vadd.f32 1.0, %v1308_v55  ;;  %v1180_v17 = vmul.f32 %v1959_v63, %v2111_v5  ;;  %v1309_v19 = vmul.f32 %v1959_v63, %v2113_v6  ;;  %1966 = vpow2.f32 %v1041_v60 }
 0x161   :  { %v1961_v30 = vpop.eup %1960  ;;  %v1043_v23 = vmul.f32 1.442695, %v800_v9  ;;  %v673_v12 = vsel %vm543_vm4, %v2109_v4, %v2119_v8  ;;  %v416_v57 = vmul.f32 %v288_v11, %v288_v11  ;;  %vm544_vm5 = vcmp.lt.f32.partialorder %v3925_v62, %v2107_v3 }
 0x162   :  { %v1564_v16 = vsel %vm536_vm13, %v1179_v10, %v1436_v22  ;;  %v1437_v20 = vadd.f32 1.0, %v1309_v19  ;;  %v1181_v24 = vmul.f32 %v1961_v30, %v2111_v5  ;;  %v1310_v26 = vmul.f32 %v1961_v30, %v2113_v6 }
 0x163   :  { %1692 = vst [vmem:[#allocation7 + $0x368] sm:$0xff] %v1564_v16  ;;  %1968 = vpow2.f32 %v1043_v23  ;;  %v801_v27 = vmul.f32 %v673_v12, %v415_v13  ;;  %v674_v29 = vsel %vm544_vm5, %v2109_v4, %v2119_v8  ;;  %v289_v15 = vsub.f32 %v3946_v7, %v2107_v3 }
 0x164   :  { %v1565_v39 = vsel %vm537_vm14, %v1180_v17, %v1437_v20  ;;  %v1438_v35 = vadd.f32 1.0, %v1310_v26  ;;  %v802_v43 = vmul.f32 %v674_v29, %v416_v57  ;;  %vm545_vm6 = vcmp.lt.f32.partialorder %v3946_v7, %v2107_v3 }
 0x165   :  { %1693 = vst [vmem:[#allocation7 + $0x370] sm:$0xff] %v1565_v39  ;;  %v1045_v28 = vmul.f32 1.442695, %v801_v27  ;;  %v417_v50 = vmul.f32 %v289_v15, %v289_v15  ;;  %v675_v46 = vsel %vm545_vm6, %v2109_v4, %v2119_v8  ;;  %v290_v21 = vsub.f32 %v3960_v31, %v2107_v3  ;;  %v4052_v39 = vld [vmem:[#allocation6 + $0x3e0] sm:$0xff] }
 0x166   :  { %v1963_v41 = vpop.eup %1962  ;;  %v1566_v42 = vsel %vm538_vm15, %v1181_v24, %v1438_v35  ;;  %v1047_v47 = vmul.f32 1.442695, %v802_v43  ;;  %vm546_vm7 = vcmp.lt.f32.partialorder %v3960_v31, %v2107_v3  ;;  %v291_v49 = vsub.f32 %v3969_v38, %v2107_v3 }
 0x167   :  { %v1965_v51 = vpop.eup %1964  ;;  %1694 = vst [vmem:[#allocation7 + $0x378] sm:$0xff] %v1566_v42  ;;  %v1182_v44 = vmul.f32 %v1963_v41, %v2111_v5  ;;  %v1311_v37 = vmul.f32 %v1963_v41, %v2113_v6  ;;  %1970 = vpow2.f32 %v1045_v28  ;;  %v803_v45 = vmul.f32 %v675_v46, %v417_v50 }
 0x168   :  { %v1183_v32 = vmul.f32 %v1965_v51, %v2111_v5  ;;  %v1312_v48 = vmul.f32 %v1965_v51, %v2113_v6  ;;  %1972 = vpow2.f32 %v1047_v47  ;;  %v418_v0 = vmul.f32 %v290_v21, %v290_v21  ;;  %v4059_v21 = vld [vmem:[#allocation6 + $0x3e8] sm:$0xff] }
 0x169   :  { %v1439_v2 = vadd.f32 1.0, %v1311_v37  ;;  %v1049_v40 = vmul.f32 1.442695, %v803_v45  ;;  %v676_v36 = vsel %vm546_vm7, %v2109_v4, %v2119_v8  ;;  %v419_v58 = vmul.f32 %v291_v49, %v291_v49 }
 0x16a   :  { %v1967_v53 = vpop.eup %1966  ;;  %v1440_v52 = vadd.f32 1.0, %v1312_v48  ;;  %v804_v1 = vmul.f32 %v676_v36, %v418_v0  ;;  %vm547_vm8 = vcmp.lt.f32.partialorder %v3969_v38, %v2107_v3  ;;  %v292_v61 = vsub.f32 %v3992_v54, %v2107_v3  ;;  %v4074_v0 = vld [vmem:[#allocation6 + $0x3f0] sm:$0xff] }
 0x16b   :  { %v1567_v10 = vsel %vm539_vm0, %v1182_v44, %v1439_v2  ;;  %v1184_v55 = vmul.f32 %v1967_v53, %v2111_v5  ;;  %v1313_v60 = vmul.f32 %v1967_v53, %v2113_v6  ;;  %1974 = vpow2.f32 %v1049_v40 }
 0x16c   :  { %1695 = vst [vmem:[#allocation7 + $0x380] sm:$0xff] %v1567_v10  ;;  %v1568_v9 = vsel %vm540_vm1, %v1183_v32, %v1440_v52  ;;  %v1051_v63 = vmul.f32 1.442695, %v804_v1  ;;  %v677_v59 = vsel %vm547_vm8, %v2109_v4, %v2119_v8  ;;  %v420_v13 = vmul.f32 %v292_v61, %v292_v61 }
 0x16d   :  { %v1969_v18 = vpop.eup %1968  ;;  %1696 = vst [vmem:[#allocation7 + $0x388] sm:$0xff] %v1568_v9  ;;  %v1441_v11 = vadd.f32 1.0, %v1313_v60  ;;  %v805_v22 = vmul.f32 %v677_v59, %v419_v58  ;;  %vm548_vm9 = vcmp.lt.f32.partialorder %v3992_v54, %v2107_v3  ;;  %v293_v17 = vsub.f32 %v4005_v56, %v2107_v3 }
 0x16e   :  { %v1185_v19 = vmul.f32 %v1969_v18, %v2111_v5  ;;  %v1314_v30 = vmul.f32 %v1969_v18, %v2113_v6  ;;  %1976 = vpow2.f32 %v1051_v63  ;;  %v678_v23 = vsel %vm548_vm9, %v2109_v4, %v2119_v8 }
 0x16f   :  { %v1569_v12 = vsel %vm541_vm2, %v1184_v55, %v1441_v11  ;;  %v1053_v57 = vmul.f32 1.442695, %v805_v22  ;;  %v806_v16 = vmul.f32 %v678_v23, %v420_v13  ;;  %v421_v20 = vmul.f32 %v293_v17, %v293_v17  ;;  %v4090_v55 = vld [vmem:[#allocation6 + $0x3f8] sm:$0xff] }
 0x170   :  { %1697 = vst [vmem:[#allocation7 + $0x390] sm:$0xff] %v1569_v12  ;;  %v1442_v24 = vadd.f32 1.0, %v1314_v30  ;;  %vm549_vm10 = vcmp.lt.f32.partialorder %v4005_v56, %v2107_v3  ;;  %v294_v26 = vsub.f32 %v4024_v14, %v2107_v3  ;;  %vm550_vm11 = vcmp.lt.f32.partialorder %v4024_v14, %v2107_v3 }
 0x171   :  { %v1971_v27 = vpop.eup %1970  ;;  %1978 = vpow2.f32 %v1053_v57  ;;  %v1055_v29 = vmul.f32 1.442695, %v806_v16  ;;  %v679_v25 = vsel %vm549_vm10, %v2109_v4, %v2119_v8  ;;  %v680_v15 = vsel %vm550_vm11, %v2109_v4, %v2119_v8 }
 0x172   :  { %v1973_v35 = vpop.eup %1972  ;;  %v1570_v43 = vsel %vm542_vm3, %v1185_v19, %v1442_v24  ;;  %v1186_v28 = vmul.f32 %v1971_v27, %v2111_v5  ;;  %v1315_v50 = vmul.f32 %v1971_v27, %v2113_v6  ;;  %v807_v46 = vmul.f32 %v679_v25, %v421_v20 }
 0x173   :  { %1698 = vst [vmem:[#allocation7 + $0x398] sm:$0xff] %v1570_v43  ;;  %v1187_v41 = vmul.f32 %v1973_v35, %v2111_v5  ;;  %v1316_v42 = vmul.f32 %v1973_v35, %v2113_v6  ;;  %1980 = vpow2.f32 %v1055_v29  ;;  %v422_v47 = vmul.f32 %v294_v26, %v294_v26 }
 0x174   :  { %v1443_v49 = vadd.f32 1.0, %v1315_v50  ;;  %v1057_v51 = vmul.f32 1.442695, %v807_v46  ;;  %v295_v33 = vsub.f32 %v4052_v39, %v2107_v3  ;;  %vm551_vm12 = vcmp.lt.f32.partialorder %v4052_v39, %v2107_v3 }
 0x175   :  { %v1975_v44 = vpop.eup %1974  ;;  %v1444_v37 = vadd.f32 1.0, %v1316_v42  ;;  %v808_v45 = vmul.f32 %v680_v15, %v422_v47  ;;  %v681_v32 = vsel %vm551_vm12, %v2109_v4, %v2119_v8  ;;  %v296_v48 = vsub.f32 %v4059_v21, %v2107_v3 }
 0x176   :  { %v1571_v2 = vsel %vm543_vm4, %v1186_v28, %v1443_v49  ;;  %v1188_v40 = vmul.f32 %v1975_v44, %v2111_v5  ;;  %v1317_v36 = vmul.f32 %v1975_v44, %v2113_v6  ;;  %1982 = vpow2.f32 %v1057_v51 }
 0x177   :  { %1699 = vst [vmem:[#allocation7 + $0x3a0] sm:$0xff] %v1571_v2  ;;  %v1572_v58 = vsel %vm544_vm5, %v1187_v41, %v1444_v37  ;;  %v1059_v53 = vmul.f32 1.442695, %v808_v45  ;;  %v423_v52 = vmul.f32 %v295_v33, %v295_v33  ;;  %v424_v1 = vmul.f32 %v296_v48, %v296_v48 }
 0x178   :  { %v1977_v61 = vpop.eup %1976  ;;  %1700 = vst [vmem:[#allocation7 + $0x3a8] sm:$0xff] %v1572_v58  ;;  %v1445_v10 = vadd.f32 1.0, %v1317_v36  ;;  %vm552_vm13 = vcmp.lt.f32.partialorder %v4059_v21, %v2107_v3  ;;  %v297_v34 = vsub.f32 %v4074_v0, %v2107_v3  ;;  %vm553_vm14 = vcmp.lt.f32.partialorder %v4074_v0, %v2107_v3 }
 0x179   :  { %v1189_v62 = vmul.f32 %v1977_v61, %v2111_v5  ;;  %v1318_v60 = vmul.f32 %v1977_v61, %v2113_v6  ;;  %1984 = vpow2.f32 %v1059_v53  ;;  %v809_v9 = vmul.f32 %v681_v32, %v423_v52 }
 0x17a   :  { %v1573_v63 = vsel %vm545_vm6, %v1188_v40, %v1445_v10  ;;  %v682_v59 = vsel %vm552_vm13, %v2109_v4, %v2119_v8  ;;  %v425_v13 = vmul.f32 %v297_v34, %v297_v34  ;;  %v683_v18 = vsel %vm553_vm14, %v2109_v4, %v2119_v8 }
 0x17b   :  { %v1979_v11 = vpop.eup %1978  ;;  %1701 = vst [vmem:[#allocation7 + $0x3b0] sm:$0xff] %v1573_v63  ;;  %v1446_v22 = vadd.f32 1.0, %v1318_v60  ;;  %v1061_v17 = vmul.f32 1.442695, %v809_v9  ;;  %v810_v19 = vmul.f32 %v682_v59, %v424_v1  ;;  %v298_v7 = vsub.f32 %v4090_v55, %v2107_v3 }
 0x17c   :  { %v1190_v30 = vmul.f32 %v1979_v11, %v2111_v5  ;;  %v1319_v23 = vmul.f32 %v1979_v11, %v2113_v6  ;;  %v811_v12 = vmul.f32 %v683_v18, %v425_v13  ;;  %vm554_vm15 = vcmp.lt.f32.partialorder %v4090_v55, %v2107_v3 }
 0x17d   :  { %v1981_v57 = vpop.eup %1980  ;;  %v1574_v16 = vsel %vm546_vm7, %v1189_v62, %v1446_v22  ;;  %1986 = vpow2.f32 %v1061_v17  ;;  %v1063_v20 = vmul.f32 1.442695, %v810_v19  ;;  %v426_v24 = vmul.f32 %v298_v7, %v298_v7 }
 0x17e   :  { %1702 = vst [vmem:[#allocation7 + $0x3b8] sm:$0xff] %v1574_v16  ;;  %v1447_v26 = vadd.f32 1.0, %v1319_v23  ;;  %v1191_v27 = vmul.f32 %v1981_v57, %v2111_v5  ;;  %v1320_v29 = vmul.f32 %v1981_v57, %v2113_v6  ;;  %v1065_v25 = vmul.f32 1.442695, %v811_v12 }
 0x17f   :  { %1988 = vpow2.f32 %v1063_v20  ;;  %v684_v15 = vsel %vm554_vm15, %v2109_v4, %v2119_v8 }
 0x180   :  { %v1983_v35 = vpop.eup %1982  ;;  %v1575_v31 = vsel %vm547_vm8, %v1190_v30, %v1447_v26  ;;  %v1448_v43 = vadd.f32 1.0, %v1320_v29  ;;  %1990 = vpow2.f32 %v1065_v25  ;;  %v812_v28 = vmul.f32 %v684_v15, %v426_v24 }
 0x181   :  { %1703 = vst [vmem:[#allocation7 + $0x3c0] sm:$0xff] %v1575_v31  ;;  %v1192_v50 = vmul.f32 %v1983_v35, %v2111_v5  ;;  %v1321_v46 = vmul.f32 %v1983_v35, %v2113_v6 }
 0x182   :  { %v1576_v41 = vsel %vm548_vm9, %v1191_v27, %v1448_v43  ;;  %v1067_v42 = vmul.f32 1.442695, %v812_v28 }
 0x183   :  { %v1985_v47 = vpop.eup %1984  ;;  %1704 = vst [vmem:[#allocation7 + $0x3c8] sm:$0xff] %v1576_v41  ;;  %v1449_v4 = vadd.f32 1.0, %v1321_v46 }
 0x184   :  { %v1193_v8 = vmul.f32 %v1985_v47, %v2111_v5  ;;  %v1322_v38 = vmul.f32 %v1985_v47, %v2113_v6  ;;  %1992 = vpow2.f32 %v1067_v42 }
 0x185   :  { %v1577_v49 = vsel %vm549_vm10, %v1192_v50, %v1449_v4 }
 0x186   :  { %1705 = vst [vmem:[#allocation7 + $0x3d0] sm:$0xff] %v1577_v49  ;;  %v1450_v51 = vadd.f32 1.0, %v1322_v38 }
 0x187   :  { %v1987_v33 = vpop.eup %1986 }
 0x188   :  { %v1578_v54 = vsel %vm550_vm11, %v1193_v8, %v1450_v51  ;;  %v1194_v44 = vmul.f32 %v1987_v33, %v2111_v5  ;;  %v1323_v37 = vmul.f32 %v1987_v33, %v2113_v6 }
 0x189   :  { %v1989_v45 = vpop.eup %1988  ;;  %1706 = vst [vmem:[#allocation7 + $0x3d8] sm:$0xff] %v1578_v54 }
 0x18a   :  { %v1991_v32 = vpop.eup %1990  ;;  %v1451_v48 = vadd.f32 1.0, %v1323_v37  ;;  %v1195_v2 = vmul.f32 %v1989_v45, %v2111_v5  ;;  %v1324_v56 = vmul.f32 %v1989_v45, %v2113_v6 }
 0x18b   :  { %v1196_v40 = vmul.f32 %v1991_v32, %v2111_v5  ;;  %v1325_v36 = vmul.f32 %v1991_v32, %v2113_v6 }
 0x18c   :  { %v1579_v14 = vsel %vm551_vm12, %v1194_v44, %v1451_v48  ;;  %v1452_v58 = vadd.f32 1.0, %v1324_v56 }
 0x18d   :  { %1707 = vst [vmem:[#allocation7 + $0x3e0] sm:$0xff] %v1579_v14  ;;  %v1453_v53 = vadd.f32 1.0, %v1325_v36 }
 0x18e   :  { %v1993_v52 = vpop.eup %1992  ;;  %v1580_v1 = vsel %vm552_vm13, %v1195_v2, %v1452_v58 }
 0x18f   :  { %1708 = vst [vmem:[#allocation7 + $0x3e8] sm:$0xff] %v1580_v1  ;;  %v1581_v61 = vsel %vm553_vm14, %v1196_v40, %v1453_v53  ;;  %v1197_v10 = vmul.f32 %v1993_v52, %v2111_v5  ;;  %v1326_v34 = vmul.f32 %v1993_v52, %v2113_v6 }
 0x190   :  { %1709 = vst [vmem:[#allocation7 + $0x3f0] sm:$0xff] %v1581_v61 }
 0x191   :  { %v1454_v39 = vadd.f32 1.0, %v1326_v34 }
 0x193   :  { %v1582_v62 = vsel %vm554_vm15, %v1197_v10, %v1454_v39 }
 0x194   :  { %1710 = vst [vmem:[#allocation7 + $0x3f8] sm:$0xff] %v1582_v62 }
 0x195   :  { %2037 = shalt.err (!%p2034_p1)
}
 0x196   :  { %s2038_s13 = scalar_lea.hbm %s4176_s2, 16384 }
 0x197   :  { %p2039_p2 = scmp.ne.s32.totalorder %s4176_s2, %s2038_s13  ;;  %p2042_p3 = scmp.lt.u32.totalorder %s2038_s13, %s4176_s2 }
 0x199   :  { %p2044_p4 = pnand %p2042_p3, %p2039_p2 }
 0x19b   :  { %2047 = shalt.err (!%p2044_p4)
}
 0x19c   :  { %1722 = dma.vmem_to_hbm [thread:$0]  %s1717_s9, 16384, %s4176_s2, [#allocation4], %s2056_s0, %s2056_s0, %s2057_s29  }
 0x19d   :  { %2052 = dma.done.wait [#allocation4], 16384  }
 0x19e   :  { %2053 = vsyncadd [#allocation4], 4294950912 }
 0x19f   :  { %1726 = vsyncpa [#allocation3], 1 }
 0x1a0   :  { %1727 = vsyncpa [#allocation4], 1 }
 0x1a1   :  { %1728 = vsyncpa [#allocation5], 1 }

</bundles_post_ra>
